<compile_context>
chip_gen: v5e
topology: v5e:2x2
jax: 0.10.0
libtpu: 0.0.40
codegen_flags: <defaults>
</compile_context>

<pallas_src>
import jax
import jax.numpy as jnp
from jax.experimental import pallas as pl
from jax.experimental.pallas import tpu as pltpu

VOCAB_SIZE = 32
EMBEDDING_DIM = 16
CONTEXT_SIZE = 2
HIDDEN = 128
VOCAB_PAD = 128            # lane-dense output width (multiple of 128)
BLOCK_B = 512              # batch-tile rows per grid step (sweepable)
MIN_PALLAS_BATCH = 1024    # below this, a fused XLA path beats the kernel launch


def _ngram_logits_kernel(ids_ref,   # VMEM (BT, C)            int32  ids, pre-offset by c*VOCAB
                         t_ref,     # VMEM (C*VOCAB, HIDDEN)   cdt    folded emb@W1 tables (stacked)
                         b1_ref,    # VMEM (1, HIDDEN)         f32    linear1 bias
                         w2_ref,    # VMEM (HIDDEN, VOCAB_PAD) cdt    linear2 weight (transposed, padded)
                         b2_ref,    # VMEM (1, VOCAB_PAD)      f32    linear2 bias (padded)
                         out_ref):  # VMEM (BT, VOCAB_PAD)            logits
    bt = out_ref.shape[0]
    cv = t_ref.shape[0]                                   # C * VOCAB

    # One-hot selection over the concatenated per-position vocabularies:
    #   concat(e_0,...,e_{C-1}) @ W1 == onehot_all @ T,  T_c = emb @ W1_c.
    # Per-position id slices are disjoint (offset by c*VOCAB), so OR is exact.
    # Compares run in int/bool; single cast to the MXU dtype at the end.
    ids = ids_ref[...]                                    # (BT, C) int32
    iota = jax.lax.broadcasted_iota(jnp.int32, (bt, cv), 1)
    hit = iota == ids[:, 0:1]
    for c in range(1, CONTEXT_SIZE):                      # static, tiny unroll
        hit = hit | (iota == ids[:, c:c + 1])
    onehot = hit.astype(t_ref.dtype)                      # exact 0/1 in bf16 or f32

    # linear1 + ReLU:  (BT, C*VOCAB) @ (C*VOCAB, HIDDEN), f32 accumulation.
    h = jnp.dot(onehot, t_ref[...], preferred_element_type=jnp.float32)
    h = jnp.maximum(h + b1_ref[...], 0.0)

    # linear2 (lane-dense, padded N):  (BT, HIDDEN) @ (HIDDEN, VOCAB_PAD).
    h = h.astype(w2_ref.dtype)                            # bf16 operand, f32 accum
    o = jnp.dot(h, w2_ref[...], preferred_element_type=jnp.float32) + b2_ref[...]
    out_ref[...] = o.astype(out_ref.dtype)


def ngram_logits_batched(token_ids, emb, w1, b1, w2, b2, *,
                         block_b=BLOCK_B,
                         compute_dtype=jnp.bfloat16,
                         out_dtype=jnp.float32,
                         min_pallas_batch=MIN_PALLAS_BATCH):
    """Pre-softmax logits for a batch of contexts.

    token_ids: (B, CONTEXT_SIZE) int32 -> (B, VOCAB_SIZE) logits (out_dtype).
    Weights use the transposed (in_features, out_features) layout:
      emb (VOCAB, E), w1 (C*E, HIDDEN), b1 (HIDDEN,), w2 (HIDDEN, VOCAB), b2 (VOCAB,).
    """
    B = token_ids.shape[0]

    # Out-of-range ids are clipped (PyTorch would raise) -- documented divergence.
    ids = jnp.clip(token_ids.astype(jnp.int32), 0, VOCAB_SIZE - 1)

    # Tiny-batch fast path: fused XLA beats pallas_call launch + pipeline prologue.
    if B < min_pallas_batch:
        return ngram_reference_logits(ids, emb, w1, b1, w2, b2).astype(out_dtype)

    # Offset each context position into its slice of the stacked table.
    ids = ids + (jnp.arange(CONTEXT_SIZE, dtype=jnp.int32) * VOCAB_SIZE)[None, :]

    # Keep >= 2 grid steps so both v7x TensorCores get work when the batch is
    # small; 128-row floor keeps tiles sublane-aligned and the MXU M-dim fed.
    while block_b > 128 and pl.cdiv(B, block_b) < 2:
        block_b //= 2
    b_pad = pl.cdiv(B, block_b) * block_b
    if b_pad != B:
        ids = jnp.pad(ids, ((0, b_pad - B), (0, 0)))

    # Fold the embedding into linear1 (once, outside the kernel), f32 math, then
    # cast the MXU operands to the compute dtype:
    #   T = [emb @ W1[0:E], emb @ W1[E:2E], ...]  -> (C*VOCAB, HIDDEN), ~16 KB bf16.
    t = jnp.concatenate(
        [emb @ w1[c * EMBEDDING_DIM:(c + 1) * EMBEDDING_DIM, :]
         for c in range(CONTEXT_SIZE)],
        axis=0).astype(compute_dtype)

    # Pad the vocab dimension to 128 lanes (unmasked stores, dense MXU N).
    vpad = VOCAB_PAD - VOCAB_SIZE
    w2p = jnp.pad(w2, ((0, 0), (0, vpad))).astype(compute_dtype)
    b2p = jnp.pad(b2.reshape(1, -1), ((0, 0), (0, vpad))).astype(jnp.float32)
    b1r = b1.reshape(1, -1).astype(jnp.float32)

    grid = (b_pad // block_b,)
    out = pl.pallas_call(
        _ngram_logits_kernel,
        out_shape=jax.ShapeDtypeStruct((b_pad, VOCAB_PAD), out_dtype),
        grid=grid,
        in_specs=[
            pl.BlockSpec((block_b, CONTEXT_SIZE), lambda i: (i, 0)),
            pl.BlockSpec((CONTEXT_SIZE * VOCAB_SIZE, HIDDEN), lambda i: (0, 0)),
            pl.BlockSpec((1, HIDDEN), lambda i: (0, 0)),
            pl.BlockSpec((HIDDEN, VOCAB_PAD), lambda i: (0, 0)),
            pl.BlockSpec((1, VOCAB_PAD), lambda i: (0, 0)),
        ],
        out_specs=pl.BlockSpec((block_b, VOCAB_PAD), lambda i: (i, 0)),
        compiler_params=pltpu.CompilerParams(dimension_semantics=("parallel",)),
    )(ids, t, b1r, w2p, b2p)

    # TODO(synk): let downstream consumers take the padded (b_pad, 128) buffer
    # directly (or fuse the un-pad) to avoid this extra slice copy.
    return out[:B, :VOCAB_SIZE]


def ngram_forward(inputs, emb, w1, b1, w2, b2):
    """Module-faithful forward for one context: inputs (CONTEXT_SIZE,) -> (1, VOCAB).

    Uses the tiny-batch XLA fast path. The module's F.log_softmax(out, dim=0)
    acts over a size-1 axis and is identically zero; it is preserved here for
    semantic fidelity (kept out of the kernel as dead transcendental work).
    """
    logits = ngram_logits_batched(inputs[None, :], emb, w1, b1, w2, b2)   # (1, VOCAB)
    return jax.nn.log_softmax(logits, axis=0)


def ngram_forward_batched(token_ids, emb, w1, b1, w2, b2, **kwargs):
    """Vmapped module semantics: each row is an independent forward call, so the
    per-call dim=0 log_softmax is over a singleton axis and the result is zero
    by construction.  Use ngram_logits_batched + log_softmax(axis=-1) if you
    actually want per-row log-probabilities."""
    logits = ngram_logits_batched(token_ids, emb, w1, b1, w2, b2, **kwargs)
    return jax.nn.log_softmax(logits[:, None, :], axis=1)[:, 0, :]


# ----------------------------- pure-JAX reference -----------------------------

def ngram_reference_logits(token_ids, emb, w1, b1, w2, b2):
    B = token_ids.shape[0]
    embeds = emb[token_ids].reshape(B, -1)                       # (B, C*E)
    h = jnp.maximum(embeds @ w1 + b1.reshape(1, -1), 0.0)        # (B, HIDDEN)
    return h @ w2 + b2.reshape(1, -1)                            # (B, VOCAB)


def ngram_reference(inputs, emb, w1, b1, w2, b2):
    o = ngram_reference_logits(inputs[None, :], emb, w1, b1, w2, b2)
    return jax.nn.log_softmax(o, axis=0)                         # dim=0, as in the module


if __name__ == "__main__":
    key = jax.random.PRNGKey(0)
    k_emb, k_w1, k_b1, k_w2, k_b2, k_idx = jax.random.split(key, 6)

    # Deterministic synthetic parameters (shapes per the module __init__;
    # nn.Linear stores weight as (out, in) -- we keep the transposed (in, out) layout).
    emb = jax.random.normal(k_emb, (VOCAB_SIZE, EMBEDDING_DIM), jnp.float32)
    lim1 = 1.0 / (CONTEXT_SIZE * EMBEDDING_DIM) ** 0.5
    w1 = jax.random.uniform(k_w1, (CONTEXT_SIZE * EMBEDDING_DIM, HIDDEN),
                            jnp.float32, -lim1, lim1)
    b1 = jax.random.uniform(k_b1, (HIDDEN,), jnp.float32, -lim1, lim1)
    lim2 = 1.0 / HIDDEN ** 0.5
    w2 = jax.random.uniform(k_w2, (HIDDEN, VOCAB_SIZE), jnp.float32, -lim2, lim2)
    b2 = jax.random.uniform(k_b2, (VOCAB_SIZE,), jnp.float32, -lim2, lim2)

    # Large-enough batch to exercise the Pallas path (>= MIN_PALLAS_BATCH).
    B = 2048
    token_ids = jax.random.randint(k_idx, (B, CONTEXT_SIZE), 0, VOCAB_SIZE, jnp.int32)
    ref_logits = ngram_reference_logits(token_ids, emb, w1, b1, w2, b2)

    # 1) Pallas kernel, f32 MXU operands: validates the folded embedding gather,
    #    both matmuls, biases and ReLU with tight tolerance.
    logits_f32 = jax.block_until_ready(
        ngram_logits_batched(token_ids, emb, w1, b1, w2, b2,
                             compute_dtype=jnp.float32, min_pallas_batch=0))
    assert logits_f32.shape == (B, VOCAB_SIZE)
    assert jnp.allclose(logits_f32, ref_logits, atol=5e-3, rtol=5e-3), (
        "f32-path logit mismatch vs. reference, max abs err = "
        f"{float(jnp.max(jnp.abs(logits_f32 - ref_logits)))}")

    # 2) Pallas kernel, default bf16 MXU operands (perf configuration): f32
    #    accumulation, bf16 operand rounding -> looser tolerance.
    logits_bf = jax.block_until_ready(
        ngram_logits_batched(token_ids, emb, w1, b1, w2, b2, min_pallas_batch=0))
    assert logits_bf.shape == (B, VOCAB_SIZE)
    assert jnp.allclose(logits_bf, ref_logits, atol=5e-2, rtol=5e-2), (
        "bf16-path logit mismatch vs. reference, max abs err = "
        f"{float(jnp.max(jnp.abs(logits_bf - ref_logits)))}")

    # 3) Batched log-probs (per-context dim=0 softmax over a size-1 axis -> zeros).
    lp_batched = jax.block_until_ready(
        ngram_forward_batched(token_ids[:8], emb, w1, b1, w2, b2))
    assert lp_batched.shape == (8, VOCAB_SIZE)
    assert jnp.allclose(lp_batched, jnp.zeros_like(lp_batched), atol=1e-6)

    # 4) Module-faithful single-context call (tiny-batch fast path).
    inputs = token_ids[0]
    log_probs = jax.block_until_ready(ngram_forward(inputs, emb, w1, b1, w2, b2))
    ref_lp = ngram_reference(inputs, emb, w1, b1, w2, b2)
    assert log_probs.shape == (1, VOCAB_SIZE)
    assert jnp.allclose(log_probs, ref_lp, atol=1e-5)

    print("KERNEL_OK")
</pallas_src>

<mosaic_0001>
module attributes {stable_mosaic.version = 11 : i64} {
  func.func @_ngram_logits_kernel(%arg0: i32, %arg1: memref<512x2xi32, #tpu.memory_space<vmem>>, %arg2: memref<64x128xf32, #tpu.memory_space<vmem>>, %arg3: memref<1x128xf32, #tpu.memory_space<vmem>>, %arg4: memref<128x128xf32, #tpu.memory_space<vmem>>, %arg5: memref<1x128xf32, #tpu.memory_space<vmem>>, %arg6: memref<512x128xf32, #tpu.memory_space<vmem>>) attributes {dimension_semantics = [#tpu.dimension_semantics<parallel>], iteration_bounds = array<i64: 4>, scalar_prefetch = 0 : i64, scratch_operands = 0 : i64, tpu.core_type = #tpu.core_type<tc>, window_params = [{transform_indices = @transform_0, window_bounds = array<i64: 512, 2>}, {pipeline_mode = #tpu.pipeline_mode<synchronous>, transform_indices = @transform_1, window_bounds = array<i64: 64, 128>}, {pipeline_mode = #tpu.pipeline_mode<synchronous>, transform_indices = @transform_2, window_bounds = array<i64: 1, 128>}, {pipeline_mode = #tpu.pipeline_mode<synchronous>, transform_indices = @transform_3, window_bounds = array<i64: 128, 128>}, {pipeline_mode = #tpu.pipeline_mode<synchronous>, transform_indices = @transform_4, window_bounds = array<i64: 1, 128>}, {transform_indices = @transform_5, window_bounds = array<i64: 512, 128>}]} {
    %c0 = arith.constant 0 : index
    %c0_0 = arith.constant 0 : index
    %0 = vector.load %arg1[%c0, %c0_0] : memref<512x2xi32, #tpu.memory_space<vmem>>, vector<512x2xi32>
    %1 = tpu.iota {dimensions = array<i32: 1>} : vector<512x64xi32>
    %2 = vector.extract_strided_slice %0 {offsets = [0, 0], sizes = [512, 1], strides = [1, 1]} : vector<512x2xi32> to vector<512x1xi32>
    %3 = vector.broadcast %2 : vector<512x1xi32> to vector<512x64xi32>
    %4 = arith.cmpi eq, %1, %3 : vector<512x64xi32>
    %5 = vector.extract_strided_slice %0 {offsets = [0, 1], sizes = [512, 1], strides = [1, 1]} : vector<512x2xi32> to vector<512x1xi32>
    %6 = vector.broadcast %5 : vector<512x1xi32> to vector<512x64xi32>
    %7 = arith.cmpi eq, %1, %6 : vector<512x64xi32>
    %8 = arith.ori %4, %7 : vector<512x64xi1>
    %9 = arith.extui %8 : vector<512x64xi1> to vector<512x64xi32>
    %10 = arith.sitofp %9 : vector<512x64xi32> to vector<512x64xf32>
    %c0_1 = arith.constant 0 : index
    %c0_2 = arith.constant 0 : index
    %11 = vector.load %arg2[%c0_1, %c0_2] : memref<64x128xf32, #tpu.memory_space<vmem>>, vector<64x128xf32>
    %cst = arith.constant dense<0.000000e+00> : vector<512x128xf32>
    %12 = tpu.matmul %10, %11, %cst {dimension_numbers = #tpu.dot_dimension_numbers<[1], [0], [0], [1], [0, 0, 1, 1], [], []>} : vector<512x64xf32>, vector<64x128xf32>, vector<512x128xf32> -> vector<512x128xf32>
    %c0_3 = arith.constant 0 : index
    %c0_4 = arith.constant 0 : index
    %13 = vector.load %arg3[%c0_3, %c0_4] : memref<1x128xf32, #tpu.memory_space<vmem>>, vector<1x128xf32>
    %14 = vector.broadcast %13 : vector<1x128xf32> to vector<512x128xf32>
    %15 = arith.addf %12, %14 : vector<512x128xf32>
    %cst_5 = arith.constant 0.000000e+00 : f32
    %16 = vector.broadcast %cst_5 : f32 to vector<512x128xf32>
    %17 = arith.maximumf %15, %16 : vector<512x128xf32>
    %c0_6 = arith.constant 0 : index
    %c0_7 = arith.constant 0 : index
    %18 = vector.load %arg4[%c0_6, %c0_7] : memref<128x128xf32, #tpu.memory_space<vmem>>, vector<128x128xf32>
    %cst_8 = arith.constant dense<0.000000e+00> : vector<512x128xf32>
    %19 = tpu.matmul %17, %18, %cst_8 {dimension_numbers = #tpu.dot_dimension_numbers<[1], [0], [0], [1], [0, 0, 1, 1], [], []>} : vector<512x128xf32>, vector<128x128xf32>, vector<512x128xf32> -> vector<512x128xf32>
    %c0_9 = arith.constant 0 : index
    %c0_10 = arith.constant 0 : index
    %20 = vector.load %arg5[%c0_9, %c0_10] : memref<1x128xf32, #tpu.memory_space<vmem>>, vector<1x128xf32>
    %21 = vector.broadcast %20 : vector<1x128xf32> to vector<512x128xf32>
    %22 = arith.addf %19, %21 : vector<512x128xf32>
    %c0_11 = arith.constant 0 : index
    %c0_12 = arith.constant 0 : index
    %23 = vector.load %arg6[%c0_11, %c0_12] : memref<512x128xf32, #tpu.memory_space<vmem>>, vector<512x128xf32>
    tpu.vector_store %arg6[%c0_11, %c0_12], %22 {strides = array<i32>} : memref<512x128xf32, #tpu.memory_space<vmem>>, vector<512x128xf32>,
    return
  }
  func.func @transform_0(%arg0: i32) -> (i32, i32) {
    %c0_i32 = arith.constant 0 : i32
    %c0_i32_0 = arith.constant 0 : i32
    return %arg0, %c0_i32 : i32, i32
  }
  func.func @transform_1(%arg0: i32) -> (i32, i32) {
    %c0_i32 = arith.constant 0 : i32
    %c0_i32_0 = arith.constant 0 : i32
    %c0_i32_1 = arith.constant 0 : i32
    return %c0_i32, %c0_i32_0 : i32, i32
  }
  func.func @transform_2(%arg0: i32) -> (i32, i32) {
    %c0_i32 = arith.constant 0 : i32
    %c0_i32_0 = arith.constant 0 : i32
    %c0_i32_1 = arith.constant 0 : i32
    return %c0_i32, %c0_i32_0 : i32, i32
  }
  func.func @transform_3(%arg0: i32) -> (i32, i32) {
    %c0_i32 = arith.constant 0 : i32
    %c0_i32_0 = arith.constant 0 : i32
    %c0_i32_1 = arith.constant 0 : i32
    return %c0_i32, %c0_i32_0 : i32, i32
  }
  func.func @transform_4(%arg0: i32) -> (i32, i32) {
    %c0_i32 = arith.constant 0 : i32
    %c0_i32_0 = arith.constant 0 : i32
    %c0_i32_1 = arith.constant 0 : i32
    return %c0_i32, %c0_i32_0 : i32, i32
  }
  func.func @transform_5(%arg0: i32) -> (i32, i32) {
    %c0_i32 = arith.constant 0 : i32
    %c0_i32_0 = arith.constant 0 : i32
    return %arg0, %c0_i32 : i32, i32
  }
}

</mosaic_0001>

<bundles_post_ra>
// kernel: tpu_custom_call.1
= control target key start
LH: loop header
LB: loop body
LE: loop exit
PB: predicated region body
PF: predicated region fallthrough
CT: control target
= control target key end

     0   :  { %10 = vsyncpa [#allocation3], 0  ;;  %s3168_s0 = inlined_call_operand.vmem [shape: s32[2048,2], index: 0, kind: input, shape index: {}]   ;;  %s3169_s1 = inlined_call_operand.vmem [shape: f32[64,128], index: 1, kind: input, shape index: {}]   ;;  %s3170_s2 = inlined_call_operand.vmem [shape: f32[1,128], index: 2, kind: input, shape index: {}]   ;;  %s3171_s3 = inlined_call_operand.vmem [shape: f32[128,128], index: 3, kind: input, shape index: {}]   ;;  %s3172_s4 = inlined_call_operand.vmem [shape: f32[1,128], index: 4, kind: input, shape index: {}]   ;;  %s3173_s5 = inlined_call_operand.hbm [shape: f32[2048,128], index: 5, kind: output, shape index: {}]  }
   0x1   :  { %12 = vsyncpa [#allocation3 + $0x1], 0  ;;  %s2252_s18 = smov 0   ;;  %s2254_s19 = smov 0  }
   0x2   :  { %s2256_s20 = smov 0   ;;  %s2258_s21 = smov 0  }
   0x3 LB: > { %s2273_s22 = sadd.s32 4294967295, %s2215_s21   ;;  %s1845_s23 = sadd.s32 4294967294, %s2215_s21   ;;  %s2215_s21 = sphi %s2258_s21, %s3179_s21   ;;  %s2211_s20 = sphi %s2256_s20, %s3178_s20   ;;  %s2207_s19 = sphi %s2254_s19, %s3177_s19   ;;  %s2203_s18 = sphi %s2252_s18, %s3176_s18  }
   0x4   : > { %s2277_s24 = sadd.s32 1, %s2215_s21   ;;  %s135_s25 = sadd.s32 1, %s2211_s20 }
   0x5   : > { %s132_s26 = ssub.s32 %s2215_s21, %s2277_s24  ;;  %p145_p0 = scmp.ne.s32.totalorder %s2211_s20, %s2207_s19 }
   0x6   : > { %p133_p1 = scmp.eq.s32.totalorder %s132_s26, 0  ;;  %p146_p2 = scmp.eq.s32.totalorder %s2273_s22, 3 }
   0x7   : > { %p151_p3 = scmp.ne.s32.totalorder %s2207_s19, %s2203_s18  ;;  %p152_p4 = scmp.eq.s32.totalorder %s1845_s23, 3 }
   0x8   : > { %s2288_s27 = scalar_select %p133_p1, %s2211_s20, %s135_s25  }
   0x9   : > { %p2290_p5 = por %p146_p2, %p145_p0  ;;  %p2294_p6 = por %p152_p4, %p151_p3 }
   0xa   : > { %p1848_p7 = scmp.ge.s32.totalorder %s2215_s21, 1  ;;  %p191_p8 = scmp.lt.s32.totalorder %s2215_s21, 5 }
   0xc   : > { %p192_p9 = pnand %p1848_p7, %p191_p8 }
   0xd   : > { %s1850_s30 = sshll.u32 (!%p192_p9), %s2273_s22, 6  ;;  %s216_s15 = sand.u32 (!%p192_p9), 1, %s2207_s19  }
   0xe   : > { %195 = sbr.rel (%p192_p9) target bundleno = 906 (0x38a), region = 40  ;;  %p220_p10 = scmp.lt.s32.totalorder (!%p192_p9), %s1850_s30, 255 }
   0xf   : > { %s1849_s16 = sshll.u32 (!%p192_p9), %s216_s15, 9  ;;  %s1985_s7 = sshll.u32 (!%p192_p9), %s2273_s22, 9 }
  0x10   : > { %s2802_s25 = scalar_lea.vmem (!%p192_p9), [#allocation2], %s1849_s16  ;;  %s1779_s11 = scalar_lea.hbm (!%p192_p9), %s3173_s5, %s1985_s7 }
  0x11   : > { %s1780_s12 = sshll.u32 (!%p192_p9), %s2802_s25, 4  ;;  %s1782_s13 = sshll.u32 (!%p192_p9), %s1779_s11, 4  ;;  %s1781_s12 = int_to_ptr.vmem [resolvable:$true] %s1780_s12  ;;  %s1783_s13 = int_to_ptr.hbm [resolvable:$true] %s1782_s13 }
  0x12   : > { %s1768_s14 = scalar_lea.sflag (!%p192_p9), [#allocation3], %s216_s15  ;;  %s2167_s22 = sshra.s32 (!%p192_p9), %s1783_s13, 4  ;;  %s2168_s22 = int_to_ptr.hbm [resolvable:$true] %s2167_s22 }
  0x13   : > { %v2217_v0 = vmov 0   ;;  %s3181_s30 = smov (!%p220_p10, %s1850_s30), 255  ;;  %v2218_v4 = vmov 1   ;;  %v1003_v13 = vld [vmem:[%s3169_s1 + $0x38] sm:$0xff]  ;;  %v1002_v16 = vld [vmem:[%s3169_s1 + $0x30] sm:$0xff]  ;;  %v1001_v19 = vld [vmem:[%s3169_s1 + $0x28] sm:$0xff]  ;;  %v290_v34 = vlaneseq  ;;  %p2174_p0 = scmp.lt.s32.totalorder %s2168_s22, %s3173_s5 }
  0x14   : > { %2072 = vset.pattern.permute.xlu1 %v2217_v0  ;;  %2070 = vset.pattern.permute.xlu0 %v2217_v0  ;;  %s1851_s6 = sshll.u32 %s3181_s30, 3  ;;  %v1000_v20 = vld [vmem:[%s3169_s1 + $0x20] sm:$0xff]  ;;  %v999_v21 = vld [vmem:[%s3169_s1 + $0x18] sm:$0xff]  ;;  %v998_v22 = vld [vmem:[%s3169_s1 + $0x10] sm:$0xff]  ;;  %vm1008_vm2 = vcmask 523264   ;;  %v2219_v40 = vmov 0.0  }
  0x15   : > { %2074 = vset.pattern.permute.xlu2 %v2217_v0  ;;  %s2307_s9 = scalar_lea.vmem %s3168_s0, %s1851_s6  ;;  %1209 = vmatpush.msra.mxu0 %v1003_v13  ;;  %v997_v23 = vld [vmem:[%s3169_s1 + $0x8] sm:$0xff]  ;;  %v996_v25 = vld [vmem:[%s3169_s1] sm:$0xff]  ;;  %v2376_v36 = vand.u32 127, %v290_v34  ;;  %v1480_v34 = vld [vmem:[%s3171_s3 + $0x30] sm:$0xff]  ;;  %s2169_s16 = scalar_lea.hbm %s2168_s22, 512 }
  0x16   : > { %v227_v1 = vld [vmem:[%s2307_s9 + $0x8] sm:$0xff]  ;;  %v226_v2 = vld [vmem:[%s2307_s9] sm:$0xff]  ;;  %v228_v3 = vld [vmem:[%s2307_s9 + $0x10] sm:$0xff]  ;;  %1986 = vmatpush.msra.mxu3 %v1003_v13  ;;  %p2170_p11 = scmp.ne.s32.totalorder %s2168_s22, %s2169_s16 }
  0x17   : > { %296 = vperm.xlu1 %2072, %v227_v1   ;;  %293 = vperm.xlu0 %2070, %v226_v2   ;;  %v229_v5 = vld [vmem:[%s2307_s9 + $0x18] sm:$0xff]  ;;  %v230_v6 = vld [vmem:[%s2307_s9 + $0x20] sm:$0xff]  ;;  %v232_v7 = vld [vmem:[%s2307_s9 + $0x30] sm:$0xff] }
  0x18   : > { %299 = vperm.xlu2 %2074, %v228_v3   ;;  %v231_v8 = vld [vmem:[%s2307_s9 + $0x28] sm:$0xff]  ;;  %v233_v10 = vld [vmem:[%s2307_s9 + $0x38] sm:$0xff]  ;;  %v234_v12 = vld [vmem:[%s2307_s9 + $0x40] sm:$0xff]  ;;  %1210 = vmatpush.msra.mxu0 %v1002_v16  ;;  %p2171_p12 = pnand %p2170_p11, %p2290_p5 }
  0x19   : > { %v235_v9 = vld [vmem:[%s2307_s9 + $0x48] sm:$0xff]  ;;  %v237_v11 = vld [vmem:[%s2307_s9 + $0x58] sm:$0xff]  ;;  %v236_v14 = vld [vmem:[%s2307_s9 + $0x50] sm:$0xff]  ;;  %1987 = vmatpush.msra.mxu3 %v1002_v16 }
  0x1a   : > { %v240_v15 = vld [vmem:[%s2307_s9 + $0x70] sm:$0xff]  ;;  %v238_v17 = vld [vmem:[%s2307_s9 + $0x60] sm:$0xff]  ;;  %v239_v18 = vld [vmem:[%s2307_s9 + $0x68] sm:$0xff]  ;;  %1211 = vmatpush.msra.mxu0 %v1001_v19  ;;  %p2172_p13 = pneg %p2171_p12 }
  0x1b   : > { %1988 = vmatpush.msra.mxu3 %v1001_v19  ;;  %v242_v26 = vld [vmem:[%s2307_s9 + $0x80] sm:$0xff]  ;;  %v241_v27 = vld [vmem:[%s2307_s9 + $0x78] sm:$0xff]  ;;  %v243_v29 = vld [vmem:[%s2307_s9 + $0x88] sm:$0xff] }
  0x1c   : > { %1212 = vmatpush.msra.mxu0 %v1000_v20  ;;  %v245_v30 = vld [vmem:[%s2307_s9 + $0x98] sm:$0xff]  ;;  %v244_v35 = vld [vmem:[%s2307_s9 + $0x90] sm:$0xff]  ;;  %v247_v42 = vld [vmem:[%s2307_s9 + $0xa8] sm:$0xff] }
  0x1d   : > { %1989 = vmatpush.msra.mxu3 %v1000_v20  ;;  %v246_v43 = vld [vmem:[%s2307_s9 + $0xa0] sm:$0xff]  ;;  %v248_v50 = vld [vmem:[%s2307_s9 + $0xb0] sm:$0xff]  ;;  %v249_v55 = vld [vmem:[%s2307_s9 + $0xb8] sm:$0xff] }
  0x1e   : > { %1213 = vmatpush.msra.mxu0 %v999_v21  ;;  %v250_v51 = vld [vmem:[%s2307_s9 + $0xc0] sm:$0xff]  ;;  %v252_v60 = vld [vmem:[%s2307_s9 + $0xd0] sm:$0xff]  ;;  %v251_v61 = vld [vmem:[%s2307_s9 + $0xc8] sm:$0xff] }
  0x1f   : > { %2073 = vset.pattern.permute.xlu1 %v2218_v4  ;;  %2071 = vset.pattern.permute.xlu0 %v2218_v4  ;;  %v1488_v16 = vld [vmem:[%s3171_s3 + $0x70] sm:$0xff] }
  0x20   : > { %552 = vperm.xlu1 %2073, %v227_v1   ;;  %549 = vperm.xlu0 %2071, %v226_v2  }
  0x21   : > { %2075 = vset.pattern.permute.xlu2 %v2218_v4  ;;  %1990 = vmatpush.msra.mxu3 %v999_v21  ;;  %v256_v21 = vld [vmem:[%s2307_s9 + $0xf0] sm:$0xff] }
  0x22   : > { %555 = vperm.xlu2 %2075, %v228_v3   ;;  %1214 = vmatpush.msra.mxu0 %v998_v22 }
  0x23   : > { %1991 = vmatpush.msra.mxu3 %v998_v22  ;;  %v1486_v22 = vld [vmem:[%s3171_s3 + $0x60] sm:$0xff] }
  0x24   : > { %1215 = vmatpush.msra.mxu0 %v997_v23 }
  0x25   : > { %1992 = vmatpush.msra.mxu3 %v997_v23  ;;  %v259_v23 = vld [vmem:[%s2307_s9 + $0x108] sm:$0xff] }
  0x26   : > { %1216 = vmatpush.msra.mxu0 %v996_v25 }
  0x27   : > { %1993 = vmatpush.msra.mxu3 %v996_v25  ;;  %v1485_v25 = vld [vmem:[%s3171_s3 + $0x58] sm:$0xff] }
  0x28   : > { %2076 = vset.pattern.permute.xlu1 %v2217_v0  ;;  %2077 = vset.pattern.permute.xlu0 %v2217_v0 }
  0x29   : > { %302 = vperm.xlu1 %2076, %v229_v5   ;;  %305 = vperm.xlu0 %2077, %v230_v6  }
  0x2a   : > { %558 = vperm.xlu2 %2075, %v229_v5  }
  0x31   : > { %2078 = vset.pattern.permute.xlu1 %v2218_v4  ;;  %2080 = vset.pattern.permute.xlu0 %v2218_v4 }
  0x32   : > { %561 = vperm.xlu1 %2078, %v230_v6   ;;  %567 = vperm.xlu0 %2080, %v232_v7  }
  0x33   : > { %2079 = vset.pattern.permute.xlu2 %v2217_v0 }
  0x34   : > { %308 = vperm.xlu2 %2079, %v231_v8  }
  0x3a   : > { %564 = vperm.xlu1 %2078, %v231_v8   ;;  %2083 = vset.pattern.permute.xlu0 %v2217_v0 }
  0x3b   : > { %320 = vperm.xlu0 %2083, %v235_v9  }
  0x3c   : > { %311 = vperm.xlu2 %2079, %v232_v7   ;;  %v253_v7 = vld [vmem:[%s2307_s9 + $0xd8] sm:$0xff] }
  0x42   : > { %2081 = vset.pattern.permute.xlu1 %v2217_v0 }
  0x43   : > { %314 = vperm.xlu1 %2081, %v233_v10   ;;  %2086 = vset.pattern.permute.xlu0 %v2218_v4 }
  0x44   : > { %2082 = vset.pattern.permute.xlu2 %v2218_v4  ;;  %582 = vperm.xlu0 %2086, %v237_v11  }
  0x45   : > { %570 = vperm.xlu2 %2082, %v233_v10  }
  0x4b   : > { %317 = vperm.xlu1 %2081, %v234_v12  }
  0x4c   : > { %2089 = vset.pattern.permute.xlu0 %v2217_v0 }
  0x4d   : > { %573 = vperm.xlu2 %2082, %v234_v12   ;;  %335 = vperm.xlu0 %2089, %v240_v15  }
  0x53   : > { %2084 = vset.pattern.permute.xlu1 %v2218_v4 }
  0x54   : > { %576 = vperm.xlu1 %2084, %v235_v9   ;;  %v255_v9 = vld [vmem:[%s2307_s9 + $0xe8] sm:$0xff] }
  0x55   : > { %2085 = vset.pattern.permute.xlu2 %v2217_v0  ;;  %2092 = vset.pattern.permute.xlu0 %v2218_v4 }
  0x56   : > { %323 = vperm.xlu2 %2085, %v236_v14   ;;  %597 = vperm.xlu0 %2092, %v242_v26  }
  0x5c   : > { %579 = vperm.xlu1 %2084, %v236_v14  }
  0x5e   : > { %326 = vperm.xlu2 %2085, %v237_v11   ;;  %2095 = vset.pattern.permute.xlu0 %v2217_v0  ;;  %v254_v11 = vld [vmem:[%s2307_s9 + $0xe0] sm:$0xff] }
  0x5f   : > { %350 = vperm.xlu0 %2095, %v245_v30  }
  0x64   : > { %2087 = vset.pattern.permute.xlu1 %v2217_v0 }
  0x65   : > { %329 = vperm.xlu1 %2087, %v238_v17  }
  0x66   : > { %2088 = vset.pattern.permute.xlu2 %v2218_v4 }
  0x67   : > { %585 = vperm.xlu2 %2088, %v238_v17   ;;  %2098 = vset.pattern.permute.xlu0 %v2218_v4 }
  0x68   : > { %612 = vperm.xlu0 %2098, %v247_v42  }
  0x6d   : > { %332 = vperm.xlu1 %2087, %v239_v18  }
  0x6f   : > { %588 = vperm.xlu2 %2088, %v239_v18   ;;  %v1487_v18 = vld [vmem:[%s3171_s3 + $0x68] sm:$0xff] }
  0x70   : > { %2101 = vset.pattern.permute.xlu0 %v2217_v0 }
  0x71   : > { %365 = vperm.xlu0 %2101, %v250_v51  }
  0x72   : > { %v300_v24 = vpop.permute.xlu2 %299 }
  0x73   : > { %vm486_vm7 = vcmp.eq.s32.totalorder %v2376_v36, %v300_v24 }
  0x75   : > { %2090 = vset.pattern.permute.xlu1 %v2218_v4 }
  0x76   : > { %591 = vperm.xlu1 %2090, %v240_v15   ;;  %v1489_v15 = vld [vmem:[%s3171_s3 + $0x78] sm:$0xff] }
  0x77   : > { %2091 = vset.pattern.permute.xlu2 %v2217_v0  ;;  %1494 = vmatpush.msra.mxu1 %v1489_v15 }
  0x78   : > { %338 = vperm.xlu2 %2091, %v241_v27   ;;  %1994 = vmatpush.msra.mxu2 %v1489_v15 }
  0x79   : > { %2104 = vset.pattern.permute.xlu0 %v2218_v4  ;;  %1995 = vmatpush.msrb.mxu3 %v1489_v15 }
  0x7a   : > { %627 = vperm.xlu0 %2104, %v252_v60   ;;  %1495 = vmatpush.msra.mxu1 %v1488_v16 }
  0x7b   : > { %1996 = vmatpush.msra.mxu2 %v1488_v16  ;;  %1997 = vmatpush.msrb.mxu3 %v1488_v16 }
  0x7c   : > { %v556_v28 = vpop.permute.xlu2 %555  ;;  %1496 = vmatpush.msra.mxu1 %v1487_v18 }
  0x7d   : > { %vm742_vm8 = vcmp.eq.s32.totalorder %v2376_v36, %v556_v28  ;;  %1998 = vmatpush.msra.mxu2 %v1487_v18  ;;  %1999 = vmatpush.msrb.mxu3 %v1487_v18  ;;  %v266_v18 = vld [vmem:[%s2307_s9 + $0x140] sm:$0xff] }
  0x7e   : > { %594 = vperm.xlu1 %2090, %v241_v27   ;;  %vm806_vm9 = vmor %vm486_vm7, %vm742_vm8  ;;  %1497 = vmatpush.msra.mxu1 %v1486_v22  ;;  %v1483_v27 = vld [vmem:[%s3171_s3 + $0x48] sm:$0xff] }
  0x7f   : > { %v1854_v49 = vsel %vm806_vm9, 1.0, %v2219_v40  ;;  %2000 = vmatpush.msra.mxu2 %v1486_v22  ;;  %2001 = vmatpush.msrb.mxu3 %v1486_v22 }
  0x80   : > { %341 = vperm.xlu2 %2091, %v242_v26   ;;  %v1484_v26 = vld [vmem:[%s3171_s3 + $0x50] sm:$0xff]  ;;  %1498 = vmatpush.msra.mxu1 %v1485_v25 }
  0x81   : > { %2002 = vmatpush.msra.mxu2 %v1485_v25  ;;  %2003 = vmatpush.msrb.mxu3 %v1485_v25 }
  0x82   : > { %2107 = vset.pattern.permute.xlu0 %v2217_v0  ;;  %1499 = vmatpush.msra.mxu1 %v1484_v26 }
  0x83   : > { %380 = vperm.xlu0 %2107, %v255_v9   ;;  %2004 = vmatpush.msra.mxu2 %v1484_v26 }
  0x84   : > { %v559_v31 = vpop.permute.xlu2 %558  ;;  %1500 = vmatpush.msra.mxu1 %v1483_v27  ;;  %2005 = vmatpush.msrb.mxu3 %v1484_v26  ;;  %v267_v26 = vld [vmem:[%s2307_s9 + $0x148] sm:$0xff] }
  0x85   : > { %vm743_vm10 = vcmp.eq.s32.totalorder %v2376_v36, %v559_v31  ;;  %v1482_v31 = vld [vmem:[%s3171_s3 + $0x40] sm:$0xff]  ;;  %2006 = vmatpush.msra.mxu2 %v1483_v27 }
  0x86   : > { %2093 = vset.pattern.permute.xlu1 %v2217_v0  ;;  %1501 = vmatpush.msra.mxu1 %v1482_v31 }
  0x87   : > { %344 = vperm.xlu1 %2093, %v243_v29   ;;  %2007 = vmatpush.msrb.mxu3 %v1483_v27 }
  0x88   : > { %2094 = vset.pattern.permute.xlu2 %v2218_v4  ;;  %2008 = vmatpush.msra.mxu2 %v1482_v31 }
  0x89   : > { %v294_v32 = vpop.permute.xlu0 %293  ;;  %v297_v33 = vpop.permute.xlu1 %296  ;;  %600 = vperm.xlu2 %2094, %v243_v29   ;;  %2009 = vmatpush.msrb.mxu3 %v1482_v31 }
  0x8a   : > { %vm484_vm0 = vcmp.eq.s32.totalorder %v2376_v36, %v294_v32  ;;  %vm485_vm4 = vcmp.eq.s32.totalorder %v2376_v36, %v297_v33  ;;  %v1481_v32 = vld [vmem:[%s3171_s3 + $0x38] sm:$0xff] }
  0x8b   : > { %2110 = vset.pattern.permute.xlu0 %v2218_v4  ;;  %1502 = vmatpush.msra.mxu1 %v1481_v32 }
  0x8c   : > { %648 = vperm.xlu0 %2110, %v259_v23   ;;  %2010 = vmatpush.msra.mxu2 %v1481_v32 }
  0x8d   : > { %1503 = vmatpush.msra.mxu1 %v1480_v34  ;;  %2011 = vmatpush.msrb.mxu3 %v1481_v32 }
  0x8e   : > { %v2379_v37 = vpop.permute.xlu2 %308  ;;  %2012 = vmatpush.msra.mxu2 %v1480_v34 }
  0x8f   : > { %347 = vperm.xlu1 %2093, %v244_v35   ;;  %2013 = vmatpush.msrb.mxu3 %v1480_v34 }
  0x91   : > { %603 = vperm.xlu2 %2094, %v244_v35   ;;  %v257_v35 = vld [vmem:[%s2307_s9 + $0xf8] sm:$0xff] }
  0x92   : > { %v550_v38 = vpop.permute.xlu0 %549  ;;  %v553_v39 = vpop.permute.xlu1 %552 }
  0x93   : > { %vm740_vm1 = vcmp.eq.s32.totalorder %v2376_v36, %v550_v38  ;;  %vm741_vm5 = vcmp.eq.s32.totalorder %v2376_v36, %v553_v39 }
  0x94   : > { %vm804_vm3 = vmor %vm484_vm0, %vm740_vm1  ;;  %vm489_vm0 = vcmp.eq.s32.totalorder %v2376_v36, %v2379_v37  ;;  %2113 = vset.pattern.permute.xlu0 %v2217_v0  ;;  %v1479_v37 = vld [vmem:[%s3171_s3 + $0x28] sm:$0xff] }
  0x95   : > { %v1852_v41 = vsel %vm804_vm3, 1.0, %v2219_v40  ;;  %vm805_vm6 = vmor %vm485_vm4, %vm741_vm5  ;;  %1504 = vmatpush.msra.mxu1 %v1479_v37  ;;  %2014 = vmatpush.msra.mxu2 %v1479_v37 }
  0x96   : > { %1916 = vmatmul.msk.f32.vlgmr.msra.gmra.mxu0 %vm1008_vm2, %v1852_v41  ;;  %v312_v44 = vpop.permute.xlu2 %311  ;;  %v1853_v46 = vsel %vm805_vm6, 1.0, %v2219_v40  ;;  %v1478_v41 = vld [vmem:[%s3171_s3 + $0x20] sm:$0xff]  ;;  %2015 = vmatpush.msrb.mxu3 %v1479_v37 }
  0x97   : > { %2096 = vset.pattern.permute.xlu1 %v2218_v4  ;;  %vm490_vm4 = vcmp.eq.s32.totalorder %v2376_v36, %v312_v44  ;;  %1505 = vmatpush.msra.mxu1 %v1478_v41 }
  0x98   : > { %606 = vperm.xlu1 %2096, %v245_v30   ;;  %2016 = vmatpush.msra.mxu2 %v1478_v41 }
  0x99   : > { %2097 = vset.pattern.permute.xlu2 %v2217_v0  ;;  %2017 = vmatpush.msrb.mxu3 %v1478_v41 }
  0x9a   : > { %353 = vperm.xlu2 %2097, %v246_v43  }
  0x9b   : > { %v303_v45 = vpop.permute.xlu1 %302  ;;  %v306_v52 = vpop.permute.xlu0 %305 }
  0x9c   : > { %vm487_vm11 = vcmp.eq.s32.totalorder %v2376_v36, %v303_v45  ;;  %vm488_vm14 = vcmp.eq.s32.totalorder %v2376_v36, %v306_v52  ;;  %v260_v45 = vld [vmem:[%s2307_s9 + $0x110] sm:$0xff] }
  0x9d   : > { %vm807_vm12 = vmor %vm487_vm11, %vm743_vm10 }
  0x9e   : > { %1917 = vmatmul.msk.f32.gmra.mxu0 %vm1008_vm2, %v1853_v46  ;;  %v1855_v53 = vsel %vm807_vm12, 1.0, %v2219_v40 }
  0x9f   : > { %v571_v48 = vpop.permute.xlu2 %570 }
  0xa0   : > { %609 = vperm.xlu1 %2096, %v246_v43   ;;  %vm747_vm7 = vcmp.eq.s32.totalorder %v2376_v36, %v571_v48  ;;  %v258_v43 = vld [vmem:[%s2307_s9 + $0x100] sm:$0xff]  ;;  %v1475_v48 = vld [vmem:[%s3171_s3 + $0x8] sm:$0xff] }
  0xa1   : > { %389 = vperm.xlu0 %2113, %v258_v43  }
  0xa2   : > { %356 = vperm.xlu2 %2097, %v247_v42   ;;  %v1477_v42 = vld [vmem:[%s3171_s3 + $0x18] sm:$0xff] }
  0xa3   : > { %1506 = vmatpush.msra.mxu1 %v1477_v42  ;;  %2018 = vmatpush.msra.mxu2 %v1477_v42 }
  0xa4   : > { %v562_v47 = vpop.permute.xlu1 %561  ;;  %v568_v62 = vpop.permute.xlu0 %567  ;;  %2019 = vmatpush.msrb.mxu3 %v1477_v42 }
  0xa5   : > { %vm744_vm13 = vcmp.eq.s32.totalorder %v2376_v36, %v562_v47  ;;  %vm746_vm5 = vcmp.eq.s32.totalorder %v2376_v36, %v568_v62  ;;  %v1476_v47 = vld [vmem:[%s3171_s3 + $0x10] sm:$0xff]  ;;  %v263_v62 = vld [vmem:[%s2307_s9 + $0x128] sm:$0xff] }
  0xa6   : > { %1918 = vmatmul.msk.f32.gmra.mxu0 %vm1008_vm2, %v1854_v49  ;;  %vm808_vm15 = vmor %vm488_vm14, %vm744_vm13  ;;  %1507 = vmatpush.msra.mxu1 %v1476_v47 }
  0xa7   : > { %v574_v56 = vpop.permute.xlu2 %573  ;;  %v1856_v57 = vsel %vm808_vm15, 1.0, %v2219_v40  ;;  %vm810_vm6 = vmor %vm490_vm4, %vm746_vm5  ;;  %2020 = vmatpush.msra.mxu2 %v1476_v47  ;;  %2021 = vmatpush.msrb.mxu3 %v1476_v47 }
  0xa8   : > { %2099 = vset.pattern.permute.xlu1 %v2217_v0  ;;  %v1858_v3 = vsel %vm810_vm6, 1.0, %v2219_v40  ;;  %vm748_vm10 = vcmp.eq.s32.totalorder %v2376_v36, %v574_v56  ;;  %1508 = vmatpush.msra.mxu1 %v1475_v48  ;;  %v262_v56 = vld [vmem:[%s2307_s9 + $0x120] sm:$0xff] }
  0xa9   : > { %359 = vperm.xlu1 %2099, %v248_v50   ;;  %2116 = vset.pattern.permute.xlu0 %v2218_v4 }
  0xaa   : > { %2100 = vset.pattern.permute.xlu2 %v2218_v4  ;;  %2022 = vmatpush.msra.mxu2 %v1475_v48 }
  0xab   : > { %615 = vperm.xlu2 %2100, %v248_v50   ;;  %v1474_v50 = vld [vmem:[%s3171_s3] sm:$0xff]  ;;  %657 = vperm.xlu0 %2116, %v262_v56  }
  0xac   : > { %v565_v54 = vpop.permute.xlu1 %564  ;;  %1509 = vmatpush.msra.mxu1 %v1474_v50  ;;  %2024 = vmatpush.msra.mxu2 %v1474_v50 }
  0xad   : > { %vm745_vm1 = vcmp.eq.s32.totalorder %v2376_v36, %v565_v54  ;;  %v321_v13 = vpop.permute.xlu0 %320  ;;  %2023 = vmatpush.msrb.mxu3 %v1475_v48 }
  0xae   : > { %1919 = vmatmul.msk.f32.gmra.mxu0 %vm1008_vm2, %v1855_v53  ;;  %vm809_vm3 = vmor %vm489_vm0, %vm745_vm1  ;;  %vm493_vm14 = vcmp.eq.s32.totalorder %v2376_v36, %v321_v13 }
  0xaf   : > { %v1857_v63 = vsel %vm809_vm3, 1.0, %v2219_v40  ;;  %2025 = vmatpush.msrb.mxu3 %v1474_v50 }
  0xb0   : > { %v2412_v59 = vpop.permute.xlu2 %323 }
  0xb1   : > { %362 = vperm.xlu1 %2099, %v249_v55   ;;  %vm494_vm0 = vcmp.eq.s32.totalorder %v2376_v36, %v2412_v59 }
  0xb3   : > { %618 = vperm.xlu2 %2100, %v249_v55   ;;  %v261_v55 = vld [vmem:[%s2307_s9 + $0x118] sm:$0xff]  ;;  %2119 = vset.pattern.permute.xlu0 %v2217_v0 }
  0xb5   : > { %v315_v58 = vpop.permute.xlu1 %314 }
  0xb6   : > { %1920 = vmatmul.msk.f32.gmra.mxu0 %vm1008_vm2, %v1856_v57  ;;  %vm491_vm8 = vcmp.eq.s32.totalorder %v2376_v36, %v315_v58  ;;  %v583_v29 = vpop.permute.xlu0 %582 }
  0xb7   : > { %vm811_vm9 = vmor %vm491_vm8, %vm747_vm7  ;;  %vm751_vm5 = vcmp.eq.s32.totalorder %v2376_v36, %v583_v29 }
  0xb8   : > { %v2423_v2 = vpop.permute.xlu2 %326  ;;  %v1859_v8 = vsel %vm811_vm9, 1.0, %v2219_v40 }
  0xb9   : > { %2102 = vset.pattern.permute.xlu1 %v2218_v4  ;;  %vm495_vm4 = vcmp.eq.s32.totalorder %v2376_v36, %v2423_v2  ;;  %v2576_v2 = vld [vmem:[%s3170_s2] ss:$0 sm:$0xff] }
  0xba   : > { %621 = vperm.xlu1 %2102, %v250_v51   ;;  %vm815_vm6 = vmor %vm495_vm4, %vm751_vm5 }
  0xbb   : > { %2103 = vset.pattern.permute.xlu2 %v2217_v0  ;;  %v1863_v39 = vsel %vm815_vm6, 1.0, %v2219_v40 }
  0xbc   : > { %368 = vperm.xlu2 %2103, %v251_v61  }
  0xbd   : > { %v318_v1 = vpop.permute.xlu1 %317 }
  0xbe   : > { %1921 = vmatmul.msk.f32.gmra.mxu0 %vm1008_vm2, %v1857_v63  ;;  %vm492_vm11 = vcmp.eq.s32.totalorder %v2376_v36, %v318_v1 }
  0xbf   : > { %vm812_vm12 = vmor %vm492_vm11, %vm748_vm10  ;;  %v336_v52 = vpop.permute.xlu0 %335 }
  0xc0   : > { %v1860_v14 = vsel %vm812_vm12, 1.0, %v2219_v40 }
  0xc1   : > { %v2432_v6 = vpop.permute.xlu2 %585 }
  0xc2   : > { %624 = vperm.xlu1 %2102, %v251_v61   ;;  %vm752_vm7 = vcmp.eq.s32.totalorder %v2376_v36, %v2432_v6 }
  0xc4   : > { %371 = vperm.xlu2 %2103, %v252_v60  }
  0xc6   : > { %1922 = vmatmul.msk.f32.gmra.mxu0 %vm1008_vm2, %v1858_v3  ;;  %v577_v5 = vpop.permute.xlu1 %576 }
  0xc7   : > { %vm749_vm13 = vcmp.eq.s32.totalorder %v2376_v36, %v577_v5 }
  0xc8   : > { %vm813_vm15 = vmor %vm493_vm14, %vm749_vm13  ;;  %vm498_vm14 = vcmp.eq.s32.totalorder %v2376_v36, %v336_v52  ;;  %v598_v61 = vpop.permute.xlu0 %597 }
  0xc9   : > { %v2443_v12 = vpop.permute.xlu2 %588  ;;  %v1861_v20 = vsel %vm813_vm15, 1.0, %v2219_v40  ;;  %vm756_vm5 = vcmp.eq.s32.totalorder %v2376_v36, %v598_v61 }
  0xca   : > { %2105 = vset.pattern.permute.xlu1 %v2217_v0  ;;  %vm753_vm10 = vcmp.eq.s32.totalorder %v2376_v36, %v2443_v12 }
  0xcb   : > { %374 = vperm.xlu1 %2105, %v253_v7  }
  0xcc   : > { %2106 = vset.pattern.permute.xlu2 %v2218_v4 }
  0xcd   : > { %630 = vperm.xlu2 %2106, %v253_v7   ;;  %v264_v7 = vld [vmem:[%s2307_s9 + $0x130] sm:$0xff] }
  0xce   : > { %1923 = vmatmul.msk.f32.gmra.mxu0 %vm1008_vm2, %v1859_v8  ;;  %v580_v10 = vpop.permute.xlu1 %579 }
  0xcf   : > { %vm750_vm1 = vcmp.eq.s32.totalorder %v2376_v36, %v580_v10 }
  0xd0   : > { %vm814_vm3 = vmor %vm494_vm0, %vm750_vm1 }
  0xd1   : > { %v1862_v30 = vsel %vm814_vm3, 1.0, %v2219_v40  ;;  %v351_v22 = vpop.permute.xlu0 %350 }
  0xd2   : > { %v2461_v19 = vpop.permute.xlu2 %338 }
  0xd3   : > { %377 = vperm.xlu1 %2105, %v254_v11   ;;  %vm499_vm0 = vcmp.eq.s32.totalorder %v2376_v36, %v2461_v19 }
  0xd5   : > { %633 = vperm.xlu2 %2106, %v254_v11   ;;  %v265_v11 = vld [vmem:[%s2307_s9 + $0x138] sm:$0xff] }
  0xd6   : > { %1924 = vmatmul.msk.f32.gmra.mxu0 %vm1008_vm2, %v1860_v14  ;;  %410 = vperm.xlu0 %2119, %v265_v11  }
  0xd7   : > { %v2455_v17 = vpop.permute.xlu1 %329 }
  0xd8   : > { %vm496_vm8 = vcmp.eq.s32.totalorder %v2376_v36, %v2455_v17 }
  0xd9   : > { %vm816_vm9 = vmor %vm496_vm8, %vm752_vm7 }
  0xda   : > { %v2486_v28 = vpop.permute.xlu2 %341  ;;  %v1864_v46 = vsel %vm816_vm9, 1.0, %v2219_v40  ;;  %v613_v31 = vpop.permute.xlu0 %612 }
  0xdb   : > { %2108 = vset.pattern.permute.xlu1 %v2218_v4  ;;  %vm500_vm4 = vcmp.eq.s32.totalorder %v2376_v36, %v2486_v28 }
  0xdc   : > { %636 = vperm.xlu1 %2108, %v255_v9   ;;  %vm820_vm6 = vmor %vm500_vm4, %vm756_vm5  ;;  %vm761_vm5 = vcmp.eq.s32.totalorder %v2376_v36, %v613_v31 }
  0xdd   : > { %2109 = vset.pattern.permute.xlu2 %v2217_v0  ;;  %v1868_v8 = vsel %vm820_vm6, 1.0, %v2219_v40 }
  0xde   : > { %1925 = vmatmul.msk.f32.gmra.mxu0 %vm1008_vm2, %v1861_v20  ;;  %383 = vperm.xlu2 %2109, %v256_v21  }
  0xdf   : > { %v2475_v24 = vpop.permute.xlu1 %332  ;;  %2122 = vset.pattern.permute.xlu0 %v2218_v4 }
  0xe0   : > { %vm497_vm11 = vcmp.eq.s32.totalorder %v2376_v36, %v2475_v24  ;;  %672 = vperm.xlu0 %2122, %v267_v26  }
  0xe1   : > { %vm817_vm12 = vmor %vm497_vm11, %vm753_vm10 }
  0xe2   : > { %v1865_v53 = vsel %vm817_vm12, 1.0, %v2219_v40 }
  0xe3   : > { %v2510_v38 = vpop.permute.xlu2 %600  ;;  %v366_v42 = vpop.permute.xlu0 %365 }
  0xe4   : > { %639 = vperm.xlu1 %2108, %v256_v21   ;;  %vm757_vm7 = vcmp.eq.s32.totalorder %v2376_v36, %v2510_v38 }
  0xe6   : > { %1926 = vmatmul.msk.f32.gmra.mxu0 %vm1008_vm2, %v1862_v30  ;;  %392 = vperm.xlu2 %2109, %v259_v23  }
  0xe8   : > { %v2500_v33 = vpop.permute.xlu1 %591  ;;  %2125 = vset.pattern.permute.xlu0 %v2217_v0 }
  0xe9   : > { %vm754_vm13 = vcmp.eq.s32.totalorder %v2376_v36, %v2500_v33  ;;  %v268_v33 = vld [vmem:[%s2307_s9 + $0x150] sm:$0xff] }
  0xea   : > { %vm818_vm15 = vmor %vm498_vm14, %vm754_vm13  ;;  %vm503_vm14 = vcmp.eq.s32.totalorder %v2376_v36, %v351_v22 }
  0xeb   : > { %v2535_v49 = vpop.permute.xlu2 %603  ;;  %v1866_v58 = vsel %vm818_vm15, 1.0, %v2219_v40 }
  0xec   : > { %2111 = vset.pattern.permute.xlu1 %v2217_v0  ;;  %vm758_vm10 = vcmp.eq.s32.totalorder %v2376_v36, %v2535_v49  ;;  %v2650_v50 = vpop.permute.xlu0 %627 }
  0xed   : > { %386 = vperm.xlu1 %2111, %v257_v35  }
  0xee   : > { %1927 = vmatmul.msk.f32.gmra.mxu0 %vm1008_vm2, %v1863_v39  ;;  %2112 = vset.pattern.permute.xlu2 %v2218_v4 }
  0xef   : > { %642 = vperm.xlu2 %2112, %v257_v35  }
  0xf0   : > { %v595_v44 = vpop.permute.xlu1 %594 }
  0xf1   : > { %vm755_vm1 = vcmp.eq.s32.totalorder %v2376_v36, %v595_v44 }
  0xf2   : > { %vm819_vm3 = vmor %vm499_vm0, %vm755_vm1 }
  0xf3   : > { %v1867_v63 = vsel %vm819_vm3, 1.0, %v2219_v40 }
  0xf4   : > { %v2551_v54 = vpop.permute.xlu2 %353 }
  0xf5   : > { %395 = vperm.xlu1 %2111, %v260_v45   ;;  %vm504_vm0 = vcmp.eq.s32.totalorder %v2376_v36, %v2551_v54 }
  0xf6   : > { %1928 = vmatmul.msk.f32.gmra.mxu0 %vm1008_vm2, %v1864_v46 }
  0xf7   : > { %651 = vperm.xlu2 %2112, %v260_v45  }
  0xf9   : > { %v345_v51 = vpop.permute.xlu1 %344 }
  0xfa   : > { %vm501_vm8 = vcmp.eq.s32.totalorder %v2376_v36, %v345_v51  ;;  %v270_v51 = vld [vmem:[%s2307_s9 + $0x160] sm:$0xff] }
  0xfb   : > { %vm821_vm9 = vmor %vm501_vm8, %vm757_vm7  ;;  %425 = vperm.xlu0 %2125, %v270_v51  }
  0xfc   : > { %v2558_v59 = vpop.permute.xlu2 %356  ;;  %v1869_v15 = vsel %vm821_vm9, 1.0, %v2219_v40 }
  0xfd   : > { %2114 = vset.pattern.permute.xlu1 %v2218_v4  ;;  %vm505_vm4 = vcmp.eq.s32.totalorder %v2376_v36, %v2558_v59  ;;  %v2667_v59 = vpop.permute.xlu0 %380 }
  0xfe   : > { %1929 = vmatmul.msk.f32.gmra.mxu0 %vm1008_vm2, %v1865_v53  ;;  %645 = vperm.xlu1 %2114, %v258_v43   ;;  %v269_v43 = vld [vmem:[%s2307_s9 + $0x158] sm:$0xff]  ;;  %vm825_vm6 = vmor %vm505_vm4, %vm761_vm5 }
  0xff   : > { %2115 = vset.pattern.permute.xlu2 %v2217_v0  ;;  %v1873_v47 = vsel %vm825_vm6, 1.0, %v2219_v40 }
 0x100   : > { %398 = vperm.xlu2 %2115, %v261_v55  }
 0x101   : > { %v348_v57 = vpop.permute.xlu1 %347 }
 0x102   : > { %vm502_vm11 = vcmp.eq.s32.totalorder %v2376_v36, %v348_v57 }
 0x103   : > { %vm822_vm12 = vmor %vm502_vm11, %vm758_vm10  ;;  %2128 = vset.pattern.permute.xlu0 %v2218_v4 }
 0x104   : > { %v1870_v23 = vsel %vm822_vm12, 1.0, %v2219_v40 }
 0x105   : > { %v2568_v1 = vpop.permute.xlu2 %615 }
 0x106   : > { %1930 = vmatmul.msk.f32.gmra.mxu0 %vm1008_vm2, %v1866_v58  ;;  %654 = vperm.xlu1 %2114, %v261_v55   ;;  %vm762_vm7 = vcmp.eq.s32.totalorder %v2376_v36, %v2568_v1  ;;  %v271_v58 = vld [vmem:[%s2307_s9 + $0x168] sm:$0xff] }
 0x108   : > { %401 = vperm.xlu2 %2115, %v262_v56  }
 0x10a   : > { %v607_v60 = vpop.permute.xlu1 %606 }
 0x10b   : > { %vm759_vm13 = vcmp.eq.s32.totalorder %v2376_v36, %v607_v60 }
 0x10c   : > { %vm823_vm15 = vmor %vm503_vm14, %vm759_vm13  ;;  %vm508_vm14 = vcmp.eq.s32.totalorder %v2376_v36, %v366_v42 }
 0x10d   : > { %v2588_v10 = vpop.permute.xlu2 %618  ;;  %v1871_v30 = vsel %vm823_vm15, 1.0, %v2219_v40 }
 0x10e   : > { %1931 = vmatmul.msk.f32.gmra.mxu0 %vm1008_vm2, %v1867_v63  ;;  %2117 = vset.pattern.permute.xlu1 %v2217_v0  ;;  %vm763_vm10 = vcmp.eq.s32.totalorder %v2376_v36, %v2588_v10 }
 0x10f   : > { %404 = vperm.xlu1 %2117, %v263_v62  }
 0x110   : > { %2118 = vset.pattern.permute.xlu2 %v2218_v4 }
 0x111   : > { %660 = vperm.xlu2 %2118, %v263_v62  }
 0x112   : > { %v2579_v3 = vpop.permute.xlu1 %609 }
 0x113   : > { %v1218_v5 = vpop.f32.mrf.mxu0  ;;  %vm760_vm1 = vcmp.eq.s32.totalorder %v2376_v36, %v2579_v3 }
 0x114   : > { %v1219_v6 = vadd.f32 %v2576_v2, %v1218_v5  ;;  %vm824_vm3 = vmor %vm504_vm0, %vm760_vm1  ;;  %v272_v5 = vld [vmem:[%s2307_s9 + $0x170] sm:$0xff] }
 0x115   : > { %v1872_v39 = vsel %vm824_vm3, 1.0, %v2219_v40  ;;  %687 = vperm.xlu0 %2128, %v272_v5  }
 0x116   : > { %1932 = vmatmul.msk.f32.gmra.mxu0 %vm1008_vm2, %v1868_v8  ;;  %v1410_v9 = vmax.f32 %v1219_v6, 0.0  ;;  %v2600_v17 = vpop.permute.xlu2 %368  ;;  %v649_v6 = vpop.permute.xlu0 %648 }
 0x117   : > { %407 = vperm.xlu1 %2117, %v264_v7   ;;  %vm773_vm1 = vcmp.eq.s32.totalorder %v2376_v36, %v649_v6  ;;  %vm509_vm4 = vcmp.eq.s32.totalorder %v2376_v36, %v2600_v17  ;;  %v274_v17 = vld [vmem:[%s2307_s9 + $0x180] sm:$0xff] }
 0x118   : > { %1510 = vmatmul.f32.vlgmr.msra.gmra.mxu1 %v1410_v9 }
 0x119   : > { %663 = vperm.xlu2 %2118, %v264_v7  }
 0x11b   : > { %v1221_v12 = vpop.f32.mrf.mxu0  ;;  %v2591_v13 = vpop.permute.xlu1 %359 }
 0x11c   : > { %v1222_v14 = vadd.f32 %v2576_v2, %v1221_v12  ;;  %vm506_vm8 = vcmp.eq.s32.totalorder %v2376_v36, %v2591_v13  ;;  %v273_v13 = vld [vmem:[%s2307_s9 + $0x178] sm:$0xff] }
 0x11d   : > { %vm826_vm9 = vmor %vm506_vm8, %vm762_vm7  ;;  %2131 = vset.pattern.permute.xlu0 %v2217_v0  ;;  %vm766_vm8 = vcmp.eq.s32.totalorder %v2376_v36, %v2650_v50 }
 0x11e   : > { %1933 = vmatmul.msk.f32.gmra.mxu0 %vm1008_vm2, %v1869_v15  ;;  %v1411_v16 = vmax.f32 %v1222_v14, 0.0  ;;  %v2612_v25 = vpop.permute.xlu2 %371  ;;  %v1874_v55 = vsel %vm826_vm9, 1.0, %v2219_v40 }
 0x11f   : > { %2120 = vset.pattern.permute.xlu1 %v2218_v4  ;;  %vm510_vm7 = vcmp.eq.s32.totalorder %v2376_v36, %v2612_v25 }
 0x120   : > { %1513 = vmatmul.f32.gmra.mxu1 %v1411_v16  ;;  %666 = vperm.xlu1 %2120, %v265_v11   ;;  %vm830_vm9 = vmor %vm510_vm7, %vm766_vm8 }
 0x121   : > { %2121 = vset.pattern.permute.xlu2 %v2217_v0 }
 0x122   : > { %413 = vperm.xlu2 %2121, %v266_v18  }
 0x123   : > { %v1224_v19 = vpop.f32.mrf.mxu0  ;;  %v2605_v20 = vpop.permute.xlu1 %362 }
 0x124   : > { %v1225_v21 = vadd.f32 %v2576_v2, %v1224_v19  ;;  %vm507_vm11 = vcmp.eq.s32.totalorder %v2376_v36, %v2605_v20 }
 0x125   : > { %vm827_vm12 = vmor %vm507_vm11, %vm763_vm10 }
 0x126   : > { %1934 = vmatmul.msk.f32.gmra.mxu0 %vm1008_vm2, %v1870_v23  ;;  %v1412_v24 = vmax.f32 %v1225_v21, 0.0  ;;  %v1875_v62 = vsel %vm827_vm12, 1.0, %v2219_v40 }
 0x127   : > { %v2627_v34 = vpop.permute.xlu2 %630 }
 0x128   : > { %1516 = vmatmul.f32.gmra.mxu1 %v1412_v24  ;;  %669 = vperm.xlu1 %2120, %v266_v18   ;;  %v1878_v24 = vsel %vm830_vm9, 1.0, %v2219_v40  ;;  %vm767_vm11 = vcmp.eq.s32.totalorder %v2376_v36, %v2627_v34  ;;  %v2725_v34 = vpop.permute.xlu0 %389 }
 0x12a   : > { %416 = vperm.xlu2 %2121, %v267_v26  }
 0x12b   : > { %v1227_v27 = vpop.f32.mrf.mxu0 }
 0x12c   : > { %v1228_v28 = vadd.f32 %v2576_v2, %v1227_v27  ;;  %v2616_v29 = vpop.permute.xlu1 %621  ;;  %v275_v27 = vld [vmem:[%s2307_s9 + $0x188] sm:$0xff] }
 0x12d   : > { %vm764_vm13 = vcmp.eq.s32.totalorder %v2376_v36, %v2616_v29  ;;  %440 = vperm.xlu0 %2131, %v275_v27  }
 0x12e   : > { %1935 = vmatmul.msk.f32.gmra.mxu0 %vm1008_vm2, %v1871_v30  ;;  %v1413_v32 = vmax.f32 %v1228_v28, 0.0  ;;  %vm828_vm0 = vmor %vm508_vm14, %vm764_vm13 }
 0x12f   : > { %v2640_v46 = vpop.permute.xlu2 %633  ;;  %v1876_v9 = vsel %vm828_vm0, 1.0, %v2219_v40 }
 0x130   : > { %1519 = vmatmul.f32.gmra.mxu1 %v1413_v32  ;;  %2123 = vset.pattern.permute.xlu1 %v2217_v0  ;;  %vm768_vm0 = vcmp.eq.s32.totalorder %v2376_v36, %v2640_v46  ;;  %v277_v46 = vld [vmem:[%s2307_s9 + $0x198] sm:$0xff] }
 0x131   : > { %419 = vperm.xlu1 %2123, %v268_v33  }
 0x132   : > { %2124 = vset.pattern.permute.xlu2 %v2218_v4 }
 0x133   : > { %v1230_v35 = vpop.f32.mrf.mxu0  ;;  %675 = vperm.xlu2 %2124, %v268_v33  }
 0x134   : > { %v1231_v37 = vadd.f32 %v2576_v2, %v1230_v35  ;;  %v2631_v38 = vpop.permute.xlu1 %624 }
 0x135   : > { %vm765_vm5 = vcmp.eq.s32.totalorder %v2376_v36, %v2631_v38  ;;  %2134 = vset.pattern.permute.xlu0 %v2218_v4 }
 0x136   : > { %1936 = vmatmul.msk.f32.gmra.mxu0 %vm1008_vm2, %v1872_v39  ;;  %v1414_v41 = vmax.f32 %v1231_v37, 0.0  ;;  %vm829_vm6 = vmor %vm509_vm4, %vm765_vm5  ;;  %v276_v37 = vld [vmem:[%s2307_s9 + $0x190] sm:$0xff]  ;;  %vm513_vm5 = vcmp.eq.s32.totalorder %v2376_v36, %v2667_v59  ;;  %702 = vperm.xlu0 %2134, %v277_v46  }
 0x137   : > { %v1877_v18 = vsel %vm829_vm6, 1.0, %v2219_v40 }
 0x138   : > { %1522 = vmatmul.f32.gmra.mxu1 %v1414_v41  ;;  %v2655_v54 = vpop.permute.xlu2 %383 }
 0x139   : > { %422 = vperm.xlu1 %2123, %v269_v43  }
 0x13b   : > { %v1233_v44 = vpop.f32.mrf.mxu0  ;;  %678 = vperm.xlu2 %2124, %v269_v43  }
 0x13c   : > { %v1234_v45 = vadd.f32 %v2576_v2, %v1233_v44 }
 0x13d   : > { %v2643_v48 = vpop.permute.xlu1 %374 }
 0x13e   : > { %1937 = vmatmul.msk.f32.gmra.mxu0 %vm1008_vm2, %v1873_v47  ;;  %v1415_v49 = vmax.f32 %v1234_v45, 0.0  ;;  %vm511_vm12 = vcmp.eq.s32.totalorder %v2376_v36, %v2643_v48  ;;  %v658_v45 = vpop.permute.xlu0 %657  ;;  %2137 = vset.pattern.permute.xlu0 %v2217_v0 }
 0x140   : > { %1525 = vmatmul.f32.gmra.mxu1 %v1415_v49  ;;  %v393_v3 = vpop.permute.xlu2 %392 }
 0x141   : > { %2126 = vset.pattern.permute.xlu1 %v2218_v4  ;;  %vm517_vm15 = vcmp.eq.s32.totalorder %v2376_v36, %v393_v3 }
 0x142   : > { %681 = vperm.xlu1 %2126, %v270_v51   ;;  %vm837_vm3 = vmor %vm517_vm15, %vm773_vm1 }
 0x143   : > { %v1236_v52 = vpop.f32.mrf.mxu0  ;;  %2127 = vset.pattern.permute.xlu2 %v2217_v0  ;;  %v1885_v10 = vsel %vm837_vm3, 1.0, %v2219_v40  ;;  %vm831_vm15 = vmor %vm511_vm12, %vm767_vm11  ;;  %vm776_vm11 = vcmp.eq.s32.totalorder %v2376_v36, %v658_v45 }
 0x144   : > { %v1237_v53 = vadd.f32 %v2576_v2, %v1236_v52  ;;  %428 = vperm.xlu2 %2127, %v271_v58   ;;  %1949 = vmatmul.msk.f32.vlgmr.msra.gmra.mxu3 %vm1008_vm2, %v1885_v10  ;;  %v1879_v32 = vsel %vm831_vm15, 1.0, %v2219_v40  ;;  %v2792_v10 = vld [vmem:[%s3172_s4] ss:$0 sm:$0xff] }
 0x145   : > { %v2659_v56 = vpop.permute.xlu1 %377 }
 0x146   : > { %1938 = vmatmul.msk.f32.gmra.mxu0 %vm1008_vm2, %v1874_v55  ;;  %v1416_v57 = vmax.f32 %v1237_v53, 0.0  ;;  %vm512_vm1 = vcmp.eq.s32.totalorder %v2376_v36, %v2659_v56  ;;  %v278_v53 = vld [vmem:[%s2307_s9 + $0x1a0] sm:$0xff] }
 0x147   : > { %vm832_vm3 = vmor %vm512_vm1, %vm768_vm0 }
 0x148   : > { %1528 = vmatmul.f32.gmra.mxu1 %v1416_v57  ;;  %v1880_v42 = vsel %vm832_vm3, 1.0, %v2219_v40 }
 0x149   : > { %v2694_v14 = vpop.permute.xlu2 %642 }
 0x14a   : > { %684 = vperm.xlu1 %2126, %v271_v58  }
 0x14b   : > { %v1239_v60 = vpop.f32.mrf.mxu0 }
 0x14c   : > { %v1240_v61 = vadd.f32 %v2576_v2, %v1239_v60  ;;  %431 = vperm.xlu2 %2127, %v272_v5  }
 0x14e   : > { %1939 = vmatmul.msk.f32.gmra.mxu0 %vm1008_vm2, %v1875_v62  ;;  %v1417_v63 = vmax.f32 %v1240_v61, 0.0  ;;  %v2673_v1 = vpop.permute.xlu1 %636  ;;  %v279_v61 = vld [vmem:[%s2307_s9 + $0x1a8] sm:$0xff] }
 0x14f   : > { %vm769_vm4 = vcmp.eq.s32.totalorder %v2376_v36, %v2673_v1 }
 0x150   : > { %1531 = vmatmul.f32.gmra.mxu1 %v1417_v63  ;;  %vm833_vm7 = vmor %vm513_vm5, %vm769_vm4  ;;  %vm771_vm4 = vcmp.eq.s32.totalorder %v2376_v36, %v2694_v14 }
 0x151   : > { %v652_v21 = vpop.permute.xlu2 %651  ;;  %v1881_v50 = vsel %vm833_vm7, 1.0, %v2219_v40 }
 0x152   : > { %2129 = vset.pattern.permute.xlu1 %v2217_v0  ;;  %vm774_vm10 = vcmp.eq.s32.totalorder %v2376_v36, %v652_v21 }
 0x153   : > { %v1242_v7 = vpop.f32.mrf.mxu0  ;;  %434 = vperm.xlu1 %2129, %v273_v13  }
 0x154   : > { %v1243_v8 = vadd.f32 %v2576_v2, %v1242_v7  ;;  %2130 = vset.pattern.permute.xlu2 %v2218_v4  ;;  %v411_v7 = vpop.permute.xlu0 %410 }
 0x155   : > { %690 = vperm.xlu2 %2130, %v273_v13  }
 0x156   : > { %1940 = vmatmul.msk.f32.gmra.mxu0 %vm1008_vm2, %v1876_v9  ;;  %v1418_v11 = vmax.f32 %v1243_v8, 0.0  ;;  %v2686_v12 = vpop.permute.xlu1 %639  ;;  %v280_v8 = vld [vmem:[%s2307_s9 + $0x1b0] sm:$0xff] }
 0x157   : > { %455 = vperm.xlu0 %2137, %v280_v8  }
 0x158   : > { %1534 = vmatmul.f32.gmra.mxu1 %v1418_v11 }
 0x15a   : > { %v399_v29 = vpop.permute.xlu2 %398 }
 0x15b   : > { %v1245_v15 = vpop.f32.mrf.mxu0  ;;  %437 = vperm.xlu1 %2129, %v274_v17   ;;  %vm519_vm6 = vcmp.eq.s32.totalorder %v2376_v36, %v399_v29  ;;  %v282_v29 = vld [vmem:[%s2307_s9 + $0x1c0] sm:$0xff] }
 0x15c   : > { %v1246_v16 = vadd.f32 %v2576_v2, %v1245_v15 }
 0x15d   : > { %693 = vperm.xlu2 %2130, %v274_v17   ;;  %v281_v17 = vld [vmem:[%s2307_s9 + $0x1b8] sm:$0xff] }
 0x15e   : > { %v1419_v19 = vmax.f32 %v1246_v16, 0.0  ;;  %1941 = vmatmul.msk.f32.gmra.mxu0 %vm1008_vm2, %v1877_v18 }
 0x15f   : > { %v2706_v20 = vpop.permute.xlu1 %386  ;;  %2140 = vset.pattern.permute.xlu0 %v2218_v4 }
 0x160   : > { %1537 = vmatmul.f32.gmra.mxu1 %v1419_v19  ;;  %vm515_vm5 = vcmp.eq.s32.totalorder %v2376_v36, %v2706_v20  ;;  %717 = vperm.xlu0 %2140, %v282_v29  }
 0x162   : > { %v402_v41 = vpop.permute.xlu2 %401 }
 0x163   : > { %v1248_v22 = vpop.f32.mrf.mxu0  ;;  %2132 = vset.pattern.permute.xlu1 %v2218_v4 }
 0x164   : > { %v1249_v23 = vadd.f32 %v2576_v2, %v1248_v22  ;;  %696 = vperm.xlu1 %2132, %v275_v27  }
 0x165   : > { %2133 = vset.pattern.permute.xlu2 %v2217_v0 }
 0x166   : > { %v1420_v26 = vmax.f32 %v1249_v23, 0.0  ;;  %1942 = vmatmul.msk.f32.gmra.mxu0 %vm1008_vm2, %v1878_v24  ;;  %443 = vperm.xlu2 %2133, %v276_v37  }
 0x167   : > { %v396_v25 = vpop.permute.xlu1 %395 }
 0x168   : > { %1540 = vmatmul.f32.gmra.mxu1 %v1420_v26  ;;  %vm518_vm13 = vcmp.eq.s32.totalorder %v2376_v36, %v396_v25  ;;  %2143 = vset.pattern.permute.xlu0 %v2217_v0 }
 0x169   : > { %vm838_vm14 = vmor %vm518_vm13, %vm774_vm10  ;;  %vm520_vm10 = vcmp.eq.s32.totalorder %v2376_v36, %v402_v41  ;;  %vm514_vm13 = vcmp.eq.s32.totalorder %v2376_v36, %v2655_v54 }
 0x16a   : > { %v1886_v28 = vsel %vm838_vm14, 1.0, %v2219_v40  ;;  %vm840_vm12 = vmor %vm520_vm10, %vm776_vm11  ;;  %vm770_vm14 = vcmp.eq.s32.totalorder %v2376_v36, %v2686_v12  ;;  %vm516_vm11 = vcmp.eq.s32.totalorder %v2376_v36, %v2725_v34 }
 0x16b   : > { %v1251_v30 = vpop.f32.mrf.mxu0  ;;  %1950 = vmatmul.msk.f32.gmra.mxu3 %vm1008_vm2, %v1886_v28  ;;  %v661_v52 = vpop.permute.xlu2 %660  ;;  %v1888_v55 = vsel %vm840_vm12, 1.0, %v2219_v40  ;;  %vm834_vm15 = vmor %vm514_vm13, %vm770_vm14  ;;  %vm523_vm14 = vcmp.eq.s32.totalorder %v2376_v36, %v411_v7 }
 0x16c   : > { %v1252_v31 = vadd.f32 %v2576_v2, %v1251_v30  ;;  %699 = vperm.xlu1 %2132, %v276_v37   ;;  %vm777_vm0 = vcmp.eq.s32.totalorder %v2376_v36, %v661_v52  ;;  %v1882_v58 = vsel %vm834_vm15, 1.0, %v2219_v40  ;;  %v673_v28 = vpop.permute.xlu0 %672 }
 0x16e   : > { %v1421_v33 = vmax.f32 %v1252_v31, 0.0  ;;  %1943 = vmatmul.msk.f32.gmra.mxu0 %vm1008_vm2, %v1879_v32  ;;  %446 = vperm.xlu2 %2133, %v277_v46  }
 0x170   : > { %1543 = vmatmul.f32.gmra.mxu1 %v1421_v33  ;;  %v2731_v35 = vpop.permute.xlu1 %645 }
 0x171   : > { %vm772_vm10 = vcmp.eq.s32.totalorder %v2376_v36, %v2731_v35 }
 0x172   : > { %vm836_vm12 = vmor %vm516_vm11, %vm772_vm10 }
 0x173   : > { %v1254_v38 = vpop.f32.mrf.mxu0  ;;  %v664_v60 = vpop.permute.xlu2 %663  ;;  %v1884_v15 = vsel %vm836_vm12, 1.0, %v2219_v40 }
 0x174   : > { %v1255_v39 = vadd.f32 %v2576_v2, %v1254_v38  ;;  %2135 = vset.pattern.permute.xlu1 %v2217_v0  ;;  %vm778_vm7 = vcmp.eq.s32.totalorder %v2376_v36, %v664_v60 }
 0x175   : > { %449 = vperm.xlu1 %2135, %v278_v53  }
 0x176   : > { %v1422_v43 = vmax.f32 %v1255_v39, 0.0  ;;  %1944 = vmatmul.msk.f32.gmra.mxu0 %vm1008_vm2, %v1880_v42  ;;  %2136 = vset.pattern.permute.xlu2 %v2218_v4  ;;  %v283_v39 = vld [vmem:[%s2307_s9 + $0x1c8] sm:$0xff] }
 0x177   : > { %705 = vperm.xlu2 %2136, %v278_v53  }
 0x178   : > { %1546 = vmatmul.f32.gmra.mxu1 %v1422_v43  ;;  %v655_v44 = vpop.permute.xlu1 %654 }
 0x179   : > { %vm775_vm8 = vcmp.eq.s32.totalorder %v2376_v36, %v655_v44 }
 0x17a   : > { %vm839_vm9 = vmor %vm519_vm6, %vm775_vm8 }
 0x17b   : > { %v1257_v47 = vpop.f32.mrf.mxu0  ;;  %v1887_v48 = vsel %vm839_vm9, 1.0, %v2219_v40  ;;  %vm835_vm6 = vmor %vm515_vm5, %vm771_vm4  ;;  %vm781_vm5 = vcmp.eq.s32.totalorder %v2376_v36, %v673_v28 }
 0x17c   : > { %v1258_v49 = vadd.f32 %v2576_v2, %v1257_v47  ;;  %1951 = vmatmul.msk.f32.gmra.mxu3 %vm1008_vm2, %v1887_v48  ;;  %v1883_v5 = vsel %vm835_vm6, 1.0, %v2219_v40  ;;  %v414_v12 = vpop.permute.xlu2 %413 }
 0x17d   : > { %452 = vperm.xlu1 %2135, %v279_v61  }
 0x17e   : > { %v1423_v51 = vmax.f32 %v1258_v49, 0.0  ;;  %1945 = vmatmul.msk.f32.gmra.mxu0 %vm1008_vm2, %v1881_v50  ;;  %v284_v49 = vld [vmem:[%s2307_s9 + $0x1d0] sm:$0xff] }
 0x17f   : > { %708 = vperm.xlu2 %2136, %v279_v61  }
 0x180   : > { %1549 = vmatmul.f32.gmra.mxu1 %v1423_v51 }
 0x181   : > { %v405_v56 = vpop.permute.xlu1 %404 }
 0x182   : > { %vm521_vm1 = vcmp.eq.s32.totalorder %v2376_v36, %v405_v56 }
 0x183   : > { %v1260_v57 = vpop.f32.mrf.mxu0  ;;  %vm841_vm3 = vmor %vm521_vm1, %vm777_vm0  ;;  %vm524_vm0 = vcmp.eq.s32.totalorder %v2376_v36, %v414_v12 }
 0x184   : > { %v1261_v54 = vadd.f32 %v2576_v2, %v1260_v57  ;;  %1952 = vmatmul.msk.f32.gmra.mxu3 %vm1008_vm2, %v1888_v55  ;;  %v1889_v62 = vsel %vm841_vm3, 1.0, %v2219_v40  ;;  %v417_v24 = vpop.permute.xlu2 %416 }
 0x185   : > { %2138 = vset.pattern.permute.xlu1 %v2218_v4  ;;  %vm525_vm4 = vcmp.eq.s32.totalorder %v2376_v36, %v417_v24 }
 0x186   : > { %v1424_v59 = vmax.f32 %v1261_v54, 0.0  ;;  %1946 = vmatmul.msk.f32.gmra.mxu0 %vm1008_vm2, %v1882_v58  ;;  %711 = vperm.xlu1 %2138, %v280_v8   ;;  %vm845_vm6 = vmor %vm525_vm4, %vm781_vm5  ;;  %v426_v54 = vpop.permute.xlu0 %425  ;;  %v285_v58 = vld [vmem:[%s2307_s9 + $0x1d8] sm:$0xff] }
 0x187   : > { %2139 = vset.pattern.permute.xlu2 %v2217_v0  ;;  %v1893_v41 = vsel %vm845_vm6, 1.0, %v2219_v40  ;;  %470 = vperm.xlu0 %2143, %v285_v58  }
 0x188   : > { %1552 = vmatmul.f32.gmra.mxu1 %v1424_v59  ;;  %458 = vperm.xlu2 %2139, %v281_v17  }
 0x189   : > { %v408_v63 = vpop.permute.xlu1 %407 }
 0x18a   : > { %vm522_vm8 = vcmp.eq.s32.totalorder %v2376_v36, %v408_v63 }
 0x18b   : > { %v1263_v1 = vpop.f32.mrf.mxu0  ;;  %vm842_vm9 = vmor %vm522_vm8, %vm778_vm7 }
 0x18c   : > { %v1264_v3 = vadd.f32 %v2576_v2, %v1263_v1  ;;  %1953 = vmatmul.msk.f32.gmra.mxu3 %vm1008_vm2, %v1889_v62  ;;  %v1890_v9 = vsel %vm842_vm9, 1.0, %v2219_v40 }
 0x18d   : > { %v676_v38 = vpop.permute.xlu2 %675 }
 0x18e   : > { %v1425_v6 = vmax.f32 %v1264_v3, 0.0  ;;  %1947 = vmatmul.msk.f32.gmra.mxu0 %vm1008_vm2, %v1883_v5  ;;  %714 = vperm.xlu1 %2138, %v281_v17   ;;  %vm782_vm7 = vcmp.eq.s32.totalorder %v2376_v36, %v676_v38 }
 0x18f   : > { %2146 = vset.pattern.permute.xlu0 %v2218_v4 }
 0x190   : > { %1555 = vmatmul.f32.gmra.mxu1 %v1425_v6  ;;  %461 = vperm.xlu2 %2139, %v282_v29   ;;  %v286_v6 = vld [vmem:[%s2307_s9 + $0x1e0] sm:$0xff] }
 0x192   : > { %v667_v11 = vpop.permute.xlu1 %666 }
 0x193   : > { %v1266_v13 = vpop.f32.mrf.mxu0  ;;  %vm779_vm13 = vcmp.eq.s32.totalorder %v2376_v36, %v667_v11 }
 0x194   : > { %v1267_v14 = vadd.f32 %v2576_v2, %v1266_v13  ;;  %1954 = vmatmul.msk.f32.gmra.mxu3 %vm1008_vm2, %v1890_v9  ;;  %vm843_vm15 = vmor %vm523_vm14, %vm779_vm13  ;;  %vm528_vm14 = vcmp.eq.s32.totalorder %v2376_v36, %v426_v54 }
 0x195   : > { %v1511_v16 = vpop.f32.mrf.mxu1  ;;  %v1891_v20 = vsel %vm843_vm15, 1.0, %v2219_v40  ;;  %v679_v48 = vpop.permute.xlu2 %678 }
 0x196   : > { %v1426_v18 = vmax.f32 %v1267_v14, 0.0  ;;  %v1512_v19 = vadd.f32 %v2792_v10, %v1511_v16  ;;  %1948 = vmatmul.msk.f32.gmra.mxu0 %vm1008_vm2, %v1884_v15  ;;  %2141 = vset.pattern.permute.xlu1 %v2217_v0  ;;  %vm783_vm10 = vcmp.eq.s32.totalorder %v2376_v36, %v679_v48  ;;  %v688_v15 = vpop.permute.xlu0 %687  ;;  %v287_v16 = vld [vmem:[%s2307_s9 + $0x1e8] sm:$0xff] }
 0x197   : > { %464 = vperm.xlu1 %2141, %v283_v39   ;;  %732 = vperm.xlu0 %2146, %v287_v16   ;;  %vm786_vm5 = vcmp.eq.s32.totalorder %v2376_v36, %v688_v15 }
 0x198   : > { %1703 = vst [vmem:[%s2802_s25] sm:$0xff] %v1512_v19  ;;  %1558 = vmatmul.f32.gmra.mxu1 %v1426_v18  ;;  %2142 = vset.pattern.permute.xlu2 %v2218_v4 }
 0x199   : > { %720 = vperm.xlu2 %2142, %v283_v39  }
 0x19a   : > { %v670_v21 = vpop.permute.xlu1 %669 }
 0x19b   : > { %v1269_v22 = vpop.f32.mrf.mxu0  ;;  %vm780_vm1 = vcmp.eq.s32.totalorder %v2376_v36, %v670_v21 }
 0x19c   : > { %v1270_v23 = vadd.f32 %v2576_v2, %v1269_v22  ;;  %1955 = vmatmul.msk.f32.gmra.mxu3 %vm1008_vm2, %v1891_v20  ;;  %vm844_vm3 = vmor %vm524_vm0, %vm780_vm1 }
 0x19d   : > { %v1514_v26 = vpop.f32.mrf.mxu1  ;;  %v1892_v30 = vsel %vm844_vm3, 1.0, %v2219_v40 }
 0x19e   : > { %v1427_v25 = vmax.f32 %v1270_v23, 0.0  ;;  %v1515_v27 = vadd.f32 %v2792_v10, %v1514_v26  ;;  %v429_v60 = vpop.permute.xlu2 %428  ;;  %v288_v26 = vld [vmem:[%s2307_s9 + $0x1f0] sm:$0xff] }
 0x19f   : > { %467 = vperm.xlu1 %2141, %v284_v49   ;;  %vm529_vm0 = vcmp.eq.s32.totalorder %v2376_v36, %v429_v60 }
 0x1a0   : > { %1704 = vst [vmem:[%s2802_s25 + $0x8] sm:$0xff] %v1515_v27  ;;  %1561 = vmatmul.f32.gmra.mxu1 %v1427_v25 }
 0x1a1   : > { %723 = vperm.xlu2 %2142, %v284_v49  }
 0x1a3   : > { %v1272_v31 = vpop.f32.mrf.mxu0  ;;  %v420_v32 = vpop.permute.xlu1 %419 }
 0x1a4   : > { %v1273_v33 = vadd.f32 %v2576_v2, %v1272_v31  ;;  %1956 = vmatmul.msk.f32.gmra.mxu3 %vm1008_vm2, %v1892_v30  ;;  %vm526_vm8 = vcmp.eq.s32.totalorder %v2376_v36, %v420_v32  ;;  %v289_v32 = vld [vmem:[%s2307_s9 + $0x1f8] sm:$0xff]  ;;  %s2173_s9 = scalar_lea.hbm %s3173_s5, 2048 }
 0x1a5   : > { %v1517_v34 = vpop.f32.mrf.mxu1  ;;  %vm846_vm9 = vmor %vm526_vm8, %vm782_vm7  ;;  %p2175_p1 = scmp.lt.s32.totalorder %s2173_s9, %s2169_s16 }
 0x1a6   : > { %v1428_v35 = vmax.f32 %v1273_v33, 0.0  ;;  %v1518_v37 = vadd.f32 %v2792_v10, %v1517_v34  ;;  %v1894_v50 = vsel %vm846_vm9, 1.0, %v2219_v40  ;;  %v432_v11 = vpop.permute.xlu2 %431 }
 0x1a7   : > { %2144 = vset.pattern.permute.xlu1 %v2218_v4  ;;  %vm530_vm4 = vcmp.eq.s32.totalorder %v2376_v36, %v432_v11  ;;  %p2176_p2 = por %p2175_p1, %p2174_p0 }
 0x1a8   : > { %1705 = vst [vmem:[%s2802_s25 + $0x10] sm:$0xff] %v1518_v37  ;;  %1564 = vmatmul.f32.gmra.mxu1 %v1428_v35  ;;  %726 = vperm.xlu1 %2144, %v285_v58   ;;  %vm850_vm6 = vmor %vm530_vm4, %vm786_vm5 }
 0x1a9   : > { %2145 = vset.pattern.permute.xlu2 %v2217_v0  ;;  %p2177_p3 = pnand %p2176_p2, %p2172_p13 }
 0x1aa   : > { %473 = vperm.xlu2 %2145, %v286_v6  }
 0x1ab   : > { %v1275_v42 = vpop.f32.mrf.mxu0  ;;  %v423_v44 = vpop.permute.xlu1 %422 }
 0x1ac   : > { %v1276_v43 = vadd.f32 %v2576_v2, %v1275_v42  ;;  %1957 = vmatmul.msk.f32.gmra.mxu3 %vm1008_vm2, %v1893_v41  ;;  %vm527_vm11 = vcmp.eq.s32.totalorder %v2376_v36, %v423_v44  ;;  %v441_v42 = vpop.permute.xlu0 %440 }
 0x1ad   : > { %v1520_v45 = vpop.f32.mrf.mxu1  ;;  %vm847_vm12 = vmor %vm527_vm11, %vm783_vm10 }
 0x1ae   : > { %v1429_v46 = vmax.f32 %v1276_v43, 0.0  ;;  %v1521_v47 = vadd.f32 %v2792_v10, %v1520_v45  ;;  %v1895_v59 = vsel %vm847_vm12, 1.0, %v2219_v40 }
 0x1af   : > { %v691_v24 = vpop.permute.xlu2 %690 }
 0x1b0   : > { %1706 = vst [vmem:[%s2802_s25 + $0x18] sm:$0xff] %v1521_v47  ;;  %1567 = vmatmul.f32.gmra.mxu1 %v1429_v46  ;;  %729 = vperm.xlu1 %2144, %v286_v6   ;;  %vm787_vm7 = vcmp.eq.s32.totalorder %v2376_v36, %v691_v24 }
 0x1b2   : > { %476 = vperm.xlu2 %2145, %v287_v16  }
 0x1b3   : > { %v1278_v51 = vpop.f32.mrf.mxu0 }
 0x1b4   : > { %v1279_v52 = vadd.f32 %v2576_v2, %v1278_v51  ;;  %1958 = vmatmul.msk.f32.gmra.mxu3 %vm1008_vm2, %v1894_v50  ;;  %v682_v57 = vpop.permute.xlu1 %681 }
 0x1b5   : > { %v1523_v53 = vpop.f32.mrf.mxu1  ;;  %vm784_vm13 = vcmp.eq.s32.totalorder %v2376_v36, %v682_v57 }
 0x1b6   : > { %v1430_v55 = vmax.f32 %v1279_v52, 0.0  ;;  %v1524_v56 = vadd.f32 %v2792_v10, %v1523_v53  ;;  %vm848_vm15 = vmor %vm528_vm14, %vm784_vm13  ;;  %vm533_vm14 = vcmp.eq.s32.totalorder %v2376_v36, %v441_v42 }
 0x1b7   : > { %v1896_v7 = vsel %vm848_vm15, 1.0, %v2219_v40 }
 0x1b8   : > { %1707 = vst [vmem:[%s2802_s25 + $0x20] sm:$0xff] %v1524_v56  ;;  %1570 = vmatmul.f32.gmra.mxu1 %v1430_v55  ;;  %2147 = vset.pattern.permute.xlu1 %v2217_v0  ;;  %v1898_v0 = vsel %vm850_vm6, 1.0, %v2219_v40 }
 0x1b9   : > { %479 = vperm.xlu1 %2147, %v288_v26  }
 0x1ba   : > { %2148 = vset.pattern.permute.xlu2 %v2218_v4  ;;  %v694_v4 = vpop.permute.xlu2 %693 }
 0x1bb   : > { %v1281_v61 = vpop.f32.mrf.mxu0  ;;  %735 = vperm.xlu2 %2148, %v288_v26   ;;  %vm788_vm10 = vcmp.eq.s32.totalorder %v2376_v36, %v694_v4 }
 0x1bc   : > { %v1282_v62 = vadd.f32 %v2576_v2, %v1281_v61  ;;  %1959 = vmatmul.msk.f32.gmra.mxu3 %vm1008_vm2, %v1895_v59  ;;  %v685_v5 = vpop.permute.xlu1 %684  ;;  %v703_v59 = vpop.permute.xlu0 %702 }
 0x1bd   : > { %v1526_v63 = vpop.f32.mrf.mxu1  ;;  %vm785_vm1 = vcmp.eq.s32.totalorder %v2376_v36, %v685_v5  ;;  %vm791_vm5 = vcmp.eq.s32.totalorder %v2376_v36, %v703_v59 }
 0x1be   : > { %v1431_v1 = vmax.f32 %v1282_v62, 0.0  ;;  %v1527_v3 = vadd.f32 %v2792_v10, %v1526_v63  ;;  %vm849_vm3 = vmor %vm529_vm0, %vm785_vm1 }
 0x1bf   : > { %v1897_v18 = vsel %vm849_vm3, 1.0, %v2219_v40 }
 0x1c0   : > { %1708 = vst [vmem:[%s2802_s25 + $0x28] sm:$0xff] %v1527_v3  ;;  %1573 = vmatmul.f32.gmra.mxu1 %v1431_v1 }
 0x1c1   : > { %482 = vperm.xlu1 %2147, %v289_v32  }
 0x1c2   : > { %v444_v44 = vpop.permute.xlu2 %443 }
 0x1c3   : > { %v1284_v8 = vpop.f32.mrf.mxu0  ;;  %738 = vperm.xlu2 %2148, %v289_v32   ;;  %vm534_vm0 = vcmp.eq.s32.totalorder %v2376_v36, %v444_v44 }
 0x1c4   : > { %v1285_v9 = vadd.f32 %v2576_v2, %v1284_v8  ;;  %1960 = vmatmul.msk.f32.gmra.mxu3 %vm1008_vm2, %v1896_v7 }
 0x1c5   : > { %v1529_v12 = vpop.f32.mrf.mxu1  ;;  %v435_v19 = vpop.permute.xlu1 %434 }
 0x1c6   : > { %v1432_v13 = vmax.f32 %v1285_v9, 0.0  ;;  %v1530_v14 = vadd.f32 %v2792_v10, %v1529_v12  ;;  %vm531_vm8 = vcmp.eq.s32.totalorder %v2376_v36, %v435_v19 }
 0x1c7   : > { %vm851_vm9 = vmor %vm531_vm8, %vm787_vm7  ;;  %v2899_v58 = vpop.f32.mrf.mxu3 }
 0x1c8   : > { %1709 = vst [vmem:[%s2802_s25 + $0x30] sm:$0xff] %v1530_v14  ;;  %1576 = vmatmul.f32.gmra.mxu1 %v1432_v13  ;;  %v1899_v33 = vsel %vm851_vm9, 1.0, %v2219_v40 }
 0x1ca   : > { %v447_v55 = vpop.permute.xlu2 %446 }
 0x1cb   : > { %v1287_v17 = vpop.f32.mrf.mxu0  ;;  %vm535_vm4 = vcmp.eq.s32.totalorder %v2376_v36, %v447_v55 }
 0x1cc   : > { %v1288_v20 = vadd.f32 %v2576_v2, %v1287_v17  ;;  %1961 = vmatmul.msk.f32.gmra.mxu3 %vm1008_vm2, %v1897_v18  ;;  %vm855_vm6 = vmor %vm535_vm4, %vm791_vm5 }
 0x1cd   : > { %v1532_v21 = vpop.f32.mrf.mxu1  ;;  %v438_v28 = vpop.permute.xlu1 %437  ;;  %v1903_v8 = vsel %vm855_vm6, 1.0, %v2219_v40 }
 0x1ce   : > { %v1433_v22 = vmax.f32 %v1288_v20, 0.0  ;;  %v1533_v23 = vadd.f32 %v2792_v10, %v1532_v21  ;;  %vm532_vm11 = vcmp.eq.s32.totalorder %v2376_v36, %v438_v28 }
 0x1cf   : > { %vm852_vm12 = vmor %vm532_vm11, %vm788_vm10 }
 0x1d0   : > { %1710 = vst [vmem:[%s2802_s25 + $0x38] sm:$0xff] %v1533_v23  ;;  %1579 = vmatmul.f32.gmra.mxu1 %v1433_v22  ;;  %v1900_v43 = vsel %vm852_vm12, 1.0, %v2219_v40 }
 0x1d2   : > { %v706_v6 = vpop.permute.xlu2 %705 }
 0x1d3   : > { %v1290_v25 = vpop.f32.mrf.mxu0  ;;  %vm792_vm7 = vcmp.eq.s32.totalorder %v2376_v36, %v706_v6 }
 0x1d4   : > { %v1291_v27 = vadd.f32 %v2576_v2, %v1290_v25  ;;  %1962 = vmatmul.msk.f32.gmra.mxu3 %vm1008_vm2, %v1898_v0  ;;  %v456_v0 = vpop.permute.xlu0 %455 }
 0x1d5   : > { %v1535_v29 = vpop.f32.mrf.mxu1 }
 0x1d6   : > { %v1434_v30 = vmax.f32 %v1291_v27, 0.0  ;;  %v1536_v31 = vadd.f32 %v2792_v10, %v1535_v29  ;;  %v697_v41 = vpop.permute.xlu1 %696 }
 0x1d7   : > { %vm789_vm13 = vcmp.eq.s32.totalorder %v2376_v36, %v697_v41 }
 0x1d8   : > { %1711 = vst [vmem:[%s2802_s25 + $0x40] sm:$0xff] %v1536_v31  ;;  %1582 = vmatmul.f32.gmra.mxu1 %v1434_v30  ;;  %vm853_vm15 = vmor %vm533_vm14, %vm789_vm13  ;;  %vm538_vm14 = vcmp.eq.s32.totalorder %v2376_v36, %v456_v0 }
 0x1d9   : > { %v1901_v51 = vsel %vm853_vm15, 1.0, %v2219_v40 }
 0x1da   : > { %v709_v18 = vpop.permute.xlu2 %708 }
 0x1db   : > { %v1293_v34 = vpop.f32.mrf.mxu0  ;;  %vm793_vm10 = vcmp.eq.s32.totalorder %v2376_v36, %v709_v18 }
 0x1dc   : > { %v1294_v35 = vadd.f32 %v2576_v2, %v1293_v34  ;;  %1963 = vmatmul.msk.f32.gmra.mxu3 %vm1008_vm2, %v1899_v33  ;;  %v718_v44 = vpop.permute.xlu0 %717 }
 0x1dd   : > { %v1538_v37 = vpop.f32.mrf.mxu1  ;;  %vm796_vm5 = vcmp.eq.s32.totalorder %v2376_v36, %v718_v44 }
 0x1de   : > { %v1435_v38 = vmax.f32 %v1294_v35, 0.0  ;;  %v1539_v39 = vadd.f32 %v2792_v10, %v1538_v37  ;;  %v700_v50 = vpop.permute.xlu1 %699 }
 0x1df   : > { %vm790_vm1 = vcmp.eq.s32.totalorder %v2376_v36, %v700_v50 }
 0x1e0   : > { %1712 = vst [vmem:[%s2802_s25 + $0x48] sm:$0xff] %v1539_v39  ;;  %1585 = vmatmul.f32.gmra.mxu1 %v1435_v38  ;;  %vm854_vm3 = vmor %vm534_vm0, %vm790_vm1 }
 0x1e1   : > { %v1902_v60 = vsel %vm854_vm3, 1.0, %v2219_v40 }
 0x1e2   : > { %v459_v27 = vpop.permute.xlu2 %458 }
 0x1e3   : > { %v1296_v45 = vpop.f32.mrf.mxu0  ;;  %vm539_vm0 = vcmp.eq.s32.totalorder %v2376_v36, %v459_v27 }
 0x1e4   : > { %v1297_v46 = vadd.f32 %v2576_v2, %v1296_v45  ;;  %1964 = vmatmul.msk.f32.gmra.mxu3 %vm1008_vm2, %v1900_v43 }
 0x1e5   : > { %v1541_v47 = vpop.f32.mrf.mxu1 }
 0x1e6   : > { %v1436_v48 = vmax.f32 %v1297_v46, 0.0  ;;  %v1542_v49 = vadd.f32 %v2792_v10, %v1541_v47 }
 0x1e7   : > { %v450_v62 = vpop.permute.xlu1 %449 }
 0x1e8   : > { %1713 = vst [vmem:[%s2802_s25 + $0x50] sm:$0xff] %v1542_v49  ;;  %1588 = vmatmul.f32.gmra.mxu1 %v1436_v48  ;;  %vm536_vm8 = vcmp.eq.s32.totalorder %v2376_v36, %v450_v62 }
 0x1e9   : > { %vm856_vm9 = vmor %vm536_vm8, %vm792_vm7 }
 0x1ea   : > { %v1904_v19 = vsel %vm856_vm9, 1.0, %v2219_v40  ;;  %v462_v38 = vpop.permute.xlu2 %461 }
 0x1eb   : > { %v1299_v52 = vpop.f32.mrf.mxu0  ;;  %vm540_vm4 = vcmp.eq.s32.totalorder %v2376_v36, %v462_v38 }
 0x1ec   : > { %v1300_v53 = vadd.f32 %v2576_v2, %v1299_v52  ;;  %1965 = vmatmul.msk.f32.gmra.mxu3 %vm1008_vm2, %v1901_v51  ;;  %vm860_vm6 = vmor %vm540_vm4, %vm796_vm5 }
 0x1ed   : > { %v1544_v56 = vpop.f32.mrf.mxu1 }
 0x1ee   : > { %v1437_v57 = vmax.f32 %v1300_v53, 0.0  ;;  %v1545_v54 = vadd.f32 %v2792_v10, %v1544_v56  ;;  %v2908_v7 = vpop.f32.mrf.mxu3  ;;  %v1908_v53 = vsel %vm860_vm6, 1.0, %v2219_v40 }
 0x1ef   : > { %v453_v12 = vpop.permute.xlu1 %452 }
 0x1f0   : > { %1714 = vst [vmem:[%s2802_s25 + $0x58] sm:$0xff] %v1545_v54  ;;  %1591 = vmatmul.f32.gmra.mxu1 %v1437_v57  ;;  %vm537_vm11 = vcmp.eq.s32.totalorder %v2376_v36, %v453_v12 }
 0x1f1   : > { %vm857_vm12 = vmor %vm537_vm11, %vm793_vm10 }
 0x1f2   : > { %v1905_v25 = vsel %vm857_vm12, 1.0, %v2219_v40 }
 0x1f3   : > { %v1302_v61 = vpop.f32.mrf.mxu0  ;;  %v721_v51 = vpop.permute.xlu2 %720 }
 0x1f4   : > { %v1303_v63 = vadd.f32 %v2576_v2, %v1302_v61  ;;  %1966 = vmatmul.msk.f32.gmra.mxu3 %vm1008_vm2, %v1902_v60  ;;  %v2917_v2 = vld [vmem:[%s3170_s2] ss:$0 sm:$0xff]  ;;  %vm797_vm7 = vcmp.eq.s32.totalorder %v2376_v36, %v721_v51 }
 0x1f5   : > { %v1547_v1 = vpop.f32.mrf.mxu1  ;;  %v1318_v46 = vadd.f32 %v2917_v2, %v2899_v58  ;;  %v1321_v55 = vadd.f32 %v2917_v2, %v2908_v7 }
 0x1f6   : > { %v1438_v3 = vmax.f32 %v1303_v63, 0.0  ;;  %v1548_v5 = vadd.f32 %v2792_v10, %v1547_v1 }
 0x1f7   : > { %v1443_v50 = vmax.f32 %v1318_v46, 0.0  ;;  %v1444_v58 = vmax.f32 %v1321_v55, 0.0 }
 0x1f8   : > { %1715 = vst [vmem:[%s2802_s25 + $0x60] sm:$0xff] %v1548_v5  ;;  %1594 = vmatmul.f32.gmra.mxu1 %v1438_v3  ;;  %v712_v24 = vpop.permute.xlu1 %711 }
 0x1f9   : > { %vm794_vm13 = vcmp.eq.s32.totalorder %v2376_v36, %v712_v24  ;;  %v471_v7 = vpop.permute.xlu0 %470 }
 0x1fa   : > { %vm858_vm15 = vmor %vm538_vm14, %vm794_vm13  ;;  %vm543_vm14 = vcmp.eq.s32.totalorder %v2376_v36, %v471_v7 }
 0x1fb   : > { %v1305_v9 = vpop.f32.mrf.mxu0  ;;  %v1906_v34 = vsel %vm858_vm15, 1.0, %v2219_v40  ;;  %v724_v60 = vpop.permute.xlu2 %723 }
 0x1fc   : > { %v1306_v11 = vadd.f32 %v2917_v2, %v1305_v9  ;;  %1967 = vmatmul.msk.f32.gmra.mxu3 %vm1008_vm2, %v1903_v8  ;;  %vm798_vm10 = vcmp.eq.s32.totalorder %v2376_v36, %v724_v60 }
 0x1fd   : > { %v1550_v13 = vpop.f32.mrf.mxu1 }
 0x1fe   : > { %v1439_v14 = vmax.f32 %v1306_v11, 0.0  ;;  %v1551_v15 = vadd.f32 %v2792_v10, %v1550_v13 }
 0x1ff   : > { %v2922_v16 = vpop.f32.mrf.mxu3 }
 0x200   : > { %1716 = vst [vmem:[%s2802_s25 + $0x68] sm:$0xff] %v1551_v15  ;;  %1597 = vmatmul.f32.gmra.mxu1 %v1439_v14  ;;  %v715_v33 = vpop.permute.xlu1 %714  ;;  %v1324_v62 = vadd.f32 %v2917_v2, %v2922_v16 }
 0x201   : > { %vm795_vm1 = vcmp.eq.s32.totalorder %v2376_v36, %v715_v33 }
 0x202   : > { %vm859_vm3 = vmor %vm539_vm0, %vm795_vm1  ;;  %v1445_v3 = vmax.f32 %v1324_v62, 0.0 }
 0x203   : > { %v1308_v17 = vpop.f32.mrf.mxu0  ;;  %v1907_v45 = vsel %vm859_vm3, 1.0, %v2219_v40 }
 0x204   : > { %v1309_v20 = vadd.f32 %v2917_v2, %v1308_v17  ;;  %1968 = vmatmul.msk.f32.gmra.mxu3 %vm1008_vm2, %v1904_v19  ;;  %v474_v11 = vpop.permute.xlu2 %473 }
 0x205   : > { %v1553_v21 = vpop.f32.mrf.mxu1  ;;  %vm544_vm0 = vcmp.eq.s32.totalorder %v2376_v36, %v474_v11 }
 0x206   : > { %v1440_v22 = vmax.f32 %v1309_v20, 0.0  ;;  %v1554_v23 = vadd.f32 %v2792_v10, %v1553_v21 }
 0x207   : > { %v2931_v26 = vpop.f32.mrf.mxu3 }
 0x208   : > { %1717 = vst [vmem:[%s2802_s25 + $0x70] sm:$0xff] %v1554_v23  ;;  %1600 = vmatmul.f32.gmra.mxu1 %v1440_v22  ;;  %v1327_v9 = vadd.f32 %v2917_v2, %v2931_v26 }
 0x209   : > { %v465_v47 = vpop.permute.xlu1 %464  ;;  %v733_v24 = vpop.permute.xlu0 %732 }
 0x20a   : > { %vm541_vm8 = vcmp.eq.s32.totalorder %v2376_v36, %v465_v47  ;;  %v1446_v14 = vmax.f32 %v1327_v9, 0.0  ;;  %vm801_vm5 = vcmp.eq.s32.totalorder %v2376_v36, %v733_v24 }
 0x20b   : > { %v1311_v28 = vpop.f32.mrf.mxu0  ;;  %vm861_vm9 = vmor %vm541_vm8, %vm797_vm7 }
 0x20c   : > { %v1312_v29 = vadd.f32 %v2917_v2, %v1311_v28  ;;  %1969 = vmatmul.msk.f32.gmra.mxu3 %vm1008_vm2, %v1905_v25  ;;  %v1909_v61 = vsel %vm861_vm9, 1.0, %v2219_v40  ;;  %v477_v17 = vpop.permute.xlu2 %476 }
 0x20d   : > { %v1556_v30 = vpop.f32.mrf.mxu1  ;;  %vm545_vm4 = vcmp.eq.s32.totalorder %v2376_v36, %v477_v17 }
 0x20e   : > { %v1441_v31 = vmax.f32 %v1312_v29, 0.0  ;;  %v1557_v4 = vadd.f32 %v2792_v10, %v1556_v30  ;;  %vm865_vm6 = vmor %vm545_vm4, %vm801_vm5 }
 0x20f   : > { %v2940_v32 = vpop.f32.mrf.mxu3 }
 0x210   : > { %1718 = vst [vmem:[%s2802_s25 + $0x78] sm:$0xff] %v1557_v4  ;;  %1603 = vmatmul.f32.vlgmr.msra.gmra.mxu2 %v1441_v31  ;;  %v1330_v19 = vadd.f32 %v2917_v2, %v2940_v32  ;;  %v1913_v4 = vsel %vm865_vm6, 1.0, %v2219_v40 }
 0x211   : > { %v468_v56 = vpop.permute.xlu1 %467 }
 0x212   : > { %vm542_vm11 = vcmp.eq.s32.totalorder %v2376_v36, %v468_v56  ;;  %v1447_v22 = vmax.f32 %v1330_v19, 0.0 }
 0x213   : > { %v1314_v35 = vpop.f32.mrf.mxu0  ;;  %vm862_vm12 = vmor %vm542_vm11, %vm798_vm10 }
 0x214   : > { %v1315_v37 = vadd.f32 %v2917_v2, %v1314_v35  ;;  %1970 = vmatmul.msk.f32.gmra.mxu3 %vm1008_vm2, %v1906_v34  ;;  %v1910_v8 = vsel %vm862_vm12, 1.0, %v2219_v40 }
 0x215   : > { %v1559_v39 = vpop.f32.mrf.mxu1  ;;  %v736_v29 = vpop.permute.xlu2 %735 }
 0x216   : > { %v1442_v41 = vmax.f32 %v1315_v37, 0.0  ;;  %v1560_v42 = vadd.f32 %v2792_v10, %v1559_v39  ;;  %vm802_vm7 = vcmp.eq.s32.totalorder %v2376_v36, %v736_v29 }
 0x217   : > { %v2949_v43 = vpop.f32.mrf.mxu3 }
 0x218   : > { %1719 = vst [vmem:[%s2802_s25 + $0x80] sm:$0xff] %v1560_v42  ;;  %1606 = vmatmul.f32.gmra.mxu2 %v1442_v41  ;;  %v1333_v0 = vadd.f32 %v2917_v2, %v2949_v43 }
 0x21a   : > { %v727_v5 = vpop.permute.xlu1 %726  ;;  %v1448_v28 = vmax.f32 %v1333_v0, 0.0 }
 0x21b   : > { %vm799_vm13 = vcmp.eq.s32.totalorder %v2376_v36, %v727_v5 }
 0x21c   : > { %1971 = vmatmul.msk.f32.gmra.mxu3 %vm1008_vm2, %v1907_v45  ;;  %vm863_vm15 = vmor %vm543_vm14, %vm799_vm13 }
 0x21d   : > { %v1562_v48 = vpop.f32.mrf.mxu1  ;;  %v1911_v18 = vsel %vm863_vm15, 1.0, %v2219_v40  ;;  %v739_v38 = vpop.permute.xlu2 %738 }
 0x21e   : > { %v1563_v49 = vadd.f32 %v2792_v10, %v1562_v48  ;;  %vm803_vm10 = vcmp.eq.s32.totalorder %v2376_v36, %v739_v38 }
 0x21f   : > { %v2959_v52 = vpop.f32.mrf.mxu3 }
 0x220   : > { %1720 = vst [vmem:[%s2802_s25 + $0x88] sm:$0xff] %v1563_v49  ;;  %1609 = vmatmul.f32.gmra.mxu2 %v1443_v50  ;;  %v1336_v32 = vadd.f32 %v2917_v2, %v2959_v52 }
 0x222   : > { %v730_v16 = vpop.permute.xlu1 %729  ;;  %v1449_v35 = vmax.f32 %v1336_v32, 0.0 }
 0x223   : > { %vm800_vm1 = vcmp.eq.s32.totalorder %v2376_v36, %v730_v16 }
 0x224   : > { %1972 = vmatmul.msk.f32.gmra.mxu3 %vm1008_vm2, %v1908_v53  ;;  %vm864_vm3 = vmor %vm544_vm0, %vm800_vm1 }
 0x225   : > { %v1565_v57 = vpop.f32.mrf.mxu1  ;;  %v1912_v26 = vsel %vm864_vm3, 1.0, %v2219_v40 }
 0x226   : > { %v1566_v54 = vadd.f32 %v2792_v10, %v1565_v57 }
 0x227   : > { %v2969_v59 = vpop.f32.mrf.mxu3 }
 0x228   : > { %1721 = vst [vmem:[%s2802_s25 + $0x90] sm:$0xff] %v1566_v54  ;;  %1612 = vmatmul.f32.gmra.mxu2 %v1444_v58  ;;  %v1339_v42 = vadd.f32 %v2917_v2, %v2969_v59 }
 0x22a   : > { %v1450_v45 = vmax.f32 %v1339_v42, 0.0 }
 0x22b   : > { %v480_v30 = vpop.permute.xlu1 %479 }
 0x22c   : > { %1973 = vmatmul.msk.f32.gmra.mxu3 %vm1008_vm2, %v1909_v61  ;;  %vm546_vm8 = vcmp.eq.s32.totalorder %v2376_v36, %v480_v30 }
 0x22d   : > { %v1568_v63 = vpop.f32.mrf.mxu1  ;;  %vm866_vm9 = vmor %vm546_vm8, %vm802_vm7 }
 0x22e   : > { %v1569_v1 = vadd.f32 %v2792_v10, %v1568_v63  ;;  %v1914_v41 = vsel %vm866_vm9, 1.0, %v2219_v40 }
 0x22f   : > { %v2979_v6 = vpop.f32.mrf.mxu3 }
 0x230   : > { %1722 = vst [vmem:[%s2802_s25 + $0x98] sm:$0xff] %v1569_v1  ;;  %1615 = vmatmul.f32.gmra.mxu2 %v1445_v3  ;;  %v1342_v48 = vadd.f32 %v2917_v2, %v2979_v6 }
 0x232   : > { %v1451_v50 = vmax.f32 %v1342_v48, 0.0 }
 0x233   : > { %v483_v39 = vpop.permute.xlu1 %482 }
 0x234   : > { %1974 = vmatmul.msk.f32.gmra.mxu3 %vm1008_vm2, %v1910_v8  ;;  %vm547_vm11 = vcmp.eq.s32.totalorder %v2376_v36, %v483_v39 }
 0x235   : > { %v1571_v12 = vpop.f32.mrf.mxu1  ;;  %vm867_vm12 = vmor %vm547_vm11, %vm803_vm10 }
 0x236   : > { %v1572_v13 = vadd.f32 %v2792_v10, %v1571_v12  ;;  %v1915_v47 = vsel %vm867_vm12, 1.0, %v2219_v40 }
 0x237   : > { %v2989_v15 = vpop.f32.mrf.mxu3 }
 0x238   : > { %1723 = vst [vmem:[%s2802_s25 + $0xa0] sm:$0xff] %v1572_v13  ;;  %1618 = vmatmul.f32.gmra.mxu2 %v1446_v14  ;;  %v1345_v52 = vadd.f32 %v2917_v2, %v2989_v15 }
 0x23a   : > { %v1452_v55 = vmax.f32 %v1345_v52, 0.0 }
 0x23c   : > { %1975 = vmatmul.msk.f32.gmra.mxu3 %vm1008_vm2, %v1911_v18 }
 0x23d   : > { %v1574_v20 = vpop.f32.mrf.mxu1 }
 0x23e   : > { %v1575_v21 = vadd.f32 %v2792_v10, %v1574_v20 }
 0x23f   : > { %v1347_v23 = vpop.f32.mrf.mxu3 }
 0x240   : > { %1724 = vst [vmem:[%s2802_s25 + $0xa8] sm:$0xff] %v1575_v21  ;;  %1621 = vmatmul.f32.gmra.mxu2 %v1447_v22  ;;  %v1348_v57 = vadd.f32 %v2917_v2, %v1347_v23 }
 0x242   : > { %v1453_v58 = vmax.f32 %v1348_v57, 0.0 }
 0x244   : > { %1976 = vmatmul.msk.f32.gmra.mxu3 %vm1008_vm2, %v1912_v26 }
 0x245   : > { %v1577_v25 = vpop.f32.mrf.mxu1 }
 0x246   : > { %v1578_v27 = vadd.f32 %v2792_v10, %v1577_v25 }
 0x247   : > { %v1350_v31 = vpop.f32.mrf.mxu3 }
 0x248   : > { %1725 = vst [vmem:[%s2802_s25 + $0xb0] sm:$0xff] %v1578_v27  ;;  %1624 = vmatmul.f32.gmra.mxu2 %v1448_v28  ;;  %v1351_v61 = vadd.f32 %v2917_v2, %v1350_v31 }
 0x24a   : > { %v1454_v63 = vmax.f32 %v1351_v61, 0.0 }
 0x24c   : > { %1977 = vmatmul.msk.f32.gmra.mxu3 %vm1008_vm2, %v1913_v4 }
 0x24d   : > { %v1580_v33 = vpop.f32.mrf.mxu1 }
 0x24e   : > { %v1581_v34 = vadd.f32 %v2792_v10, %v1580_v33 }
 0x24f   : > { %v1353_v37 = vpop.f32.mrf.mxu3 }
 0x250   : > { %1726 = vst [vmem:[%s2802_s25 + $0xb8] sm:$0xff] %v1581_v34  ;;  %1627 = vmatmul.f32.gmra.mxu2 %v1449_v35  ;;  %v1354_v5 = vadd.f32 %v2917_v2, %v1353_v37 }
 0x252   : > { %v1455_v7 = vmax.f32 %v1354_v5, 0.0 }
 0x254   : > { %1978 = vmatmul.msk.f32.gmra.mxu3 %vm1008_vm2, %v1914_v41 }
 0x255   : > { %v1583_v43 = vpop.f32.mrf.mxu1 }
 0x256   : > { %v1584_v44 = vadd.f32 %v2792_v10, %v1583_v43 }
 0x257   : > { %v1356_v46 = vpop.f32.mrf.mxu3 }
 0x258   : > { %1727 = vst [vmem:[%s2802_s25 + $0xc0] sm:$0xff] %v1584_v44  ;;  %1630 = vmatmul.f32.gmra.mxu2 %v1450_v45  ;;  %v1357_v11 = vadd.f32 %v2917_v2, %v1356_v46 }
 0x25a   : > { %v1456_v13 = vmax.f32 %v1357_v11, 0.0 }
 0x25c   : > { %1979 = vmatmul.msk.f32.gmra.mxu3 %vm1008_vm2, %v1915_v47 }
 0x25d   : > { %v1586_v36 = vpop.f32.mrf.mxu1 }
 0x25e   : > { %v1587_v49 = vadd.f32 %v2792_v10, %v1586_v36 }
 0x25f   : > { %v1359_v51 = vpop.f32.mrf.mxu3 }
 0x260   : > { %1728 = vst [vmem:[%s2802_s25 + $0xc8] sm:$0xff] %v1587_v49  ;;  %1633 = vmatmul.f32.gmra.mxu2 %v1451_v50  ;;  %v1360_v16 = vadd.f32 %v2917_v2, %v1359_v51 }
 0x262   : > { %v1457_v18 = vmax.f32 %v1360_v16, 0.0 }
 0x265   : > { %v1589_v53 = vpop.f32.mrf.mxu1 }
 0x266   : > { %v1590_v40 = vadd.f32 %v2792_v10, %v1589_v53 }
 0x267   : > { %v1362_v56 = vpop.f32.mrf.mxu3 }
 0x268   : > { %1729 = vst [vmem:[%s2802_s25 + $0xd0] sm:$0xff] %v1590_v40  ;;  %1636 = vmatmul.f32.gmra.mxu2 %v1452_v55  ;;  %v1363_v17 = vadd.f32 %v2917_v2, %v1362_v56 }
 0x26a   : > { %v1458_v22 = vmax.f32 %v1363_v17, 0.0 }
 0x26d   : > { %v1592_v54 = vpop.f32.mrf.mxu1 }
 0x26e   : > { %v1593_v59 = vadd.f32 %v2792_v10, %v1592_v54 }
 0x26f   : > { %v1365_v60 = vpop.f32.mrf.mxu3 }
 0x270   : > { %1730 = vst [vmem:[%s2802_s25 + $0xd8] sm:$0xff] %v1593_v59  ;;  %1639 = vmatmul.f32.gmra.mxu2 %v1453_v58  ;;  %v1366_v24 = vadd.f32 %v2917_v2, %v1365_v60 }
 0x272   : > { %v1459_v25 = vmax.f32 %v1366_v24, 0.0 }
 0x275   : > { %v1595_v62 = vpop.f32.mrf.mxu1 }
 0x276   : > { %v1596_v1 = vadd.f32 %v2792_v10, %v1595_v62 }
 0x277   : > { %v1368_v3 = vpop.f32.mrf.mxu3 }
 0x278   : > { %1731 = vst [vmem:[%s2802_s25 + $0xe0] sm:$0xff] %v1596_v1  ;;  %1642 = vmatmul.f32.gmra.mxu2 %v1454_v63  ;;  %v1369_v28 = vadd.f32 %v2917_v2, %v1368_v3 }
 0x27a   : > { %v1460_v31 = vmax.f32 %v1369_v28, 0.0 }
 0x27d   : > { %v1598_v6 = vpop.f32.mrf.mxu1 }
 0x27e   : > { %v1599_v8 = vadd.f32 %v2792_v10, %v1598_v6 }
 0x27f   : > { %v1371_v9 = vpop.f32.mrf.mxu3 }
 0x280   : > { %1732 = vst [vmem:[%s2802_s25 + $0xe8] sm:$0xff] %v1599_v8  ;;  %1645 = vmatmul.f32.gmra.mxu2 %v1455_v7  ;;  %v1372_v32 = vadd.f32 %v2917_v2, %v1371_v9 }
 0x282   : > { %v1461_v35 = vmax.f32 %v1372_v32, 0.0 }
 0x285   : > { %v1601_v12 = vpop.f32.mrf.mxu1 }
 0x286   : > { %v1602_v14 = vadd.f32 %v2792_v10, %v1601_v12 }
 0x287   : > { %v1374_v15 = vpop.f32.mrf.mxu3 }
 0x288   : > { %1733 = vst [vmem:[%s2802_s25 + $0xf0] sm:$0xff] %v1602_v14  ;;  %1648 = vmatmul.f32.gmra.mxu2 %v1456_v13  ;;  %v1375_v38 = vadd.f32 %v2917_v2, %v1374_v15  ;;  %v3083_v13 = vld [vmem:[%s3172_s4] ss:$0 sm:$0xff] }
 0x28a   : > { %v1462_v42 = vmax.f32 %v1375_v38, 0.0 }
 0x28f   : > { %v1377_v19 = vpop.f32.mrf.mxu3 }
 0x290   : > { %1651 = vmatmul.f32.gmra.mxu2 %v1457_v18  ;;  %v1378_v44 = vadd.f32 %v2917_v2, %v1377_v19 }
 0x292   : > { %v1463_v47 = vmax.f32 %v1378_v44, 0.0 }
 0x293   : > { %v1604_v20 = vpop.f32.mrf.mxu2 }
 0x294   : > { %v1605_v21 = vadd.f32 %v2792_v10, %v1604_v20 }
 0x296   : > { %1734 = vst [vmem:[%s2802_s25 + $0xf8] sm:$0xff] %v1605_v21 }
 0x297   : > { %v1380_v23 = vpop.f32.mrf.mxu3 }
 0x298   : > { %1654 = vmatmul.f32.gmra.mxu2 %v1458_v22  ;;  %v1381_v36 = vadd.f32 %v2917_v2, %v1380_v23 }
 0x29a   : > { %v1464_v51 = vmax.f32 %v1381_v36, 0.0 }
 0x29b   : > { %v1607_v26 = vpop.f32.mrf.mxu2 }
 0x29c   : > { %v1608_v0 = vadd.f32 %v2792_v10, %v1607_v26 }
 0x29e   : > { %1735 = vst [vmem:[%s2802_s25 + $0x100] sm:$0xff] %v1608_v0 }
 0x29f   : > { %v1383_v27 = vpop.f32.mrf.mxu3 }
 0x2a0   : > { %1657 = vmatmul.f32.gmra.mxu2 %v1459_v25  ;;  %v1384_v53 = vadd.f32 %v2917_v2, %v1383_v27 }
 0x2a2   : > { %v1465_v56 = vmax.f32 %v1384_v53, 0.0 }
 0x2a3   : > { %v1610_v29 = vpop.f32.mrf.mxu2 }
 0x2a4   : > { %v1611_v30 = vadd.f32 %v2792_v10, %v1610_v29 }
 0x2a6   : > { %1736 = vst [vmem:[%s2802_s25 + $0x108] sm:$0xff] %v1611_v30 }
 0x2a7   : > { %v1386_v4 = vpop.f32.mrf.mxu3 }
 0x2a8   : > { %1660 = vmatmul.f32.gmra.mxu2 %v1460_v31  ;;  %v1387_v54 = vadd.f32 %v2917_v2, %v1386_v4 }
 0x2aa   : > { %v1466_v60 = vmax.f32 %v1387_v54, 0.0 }
 0x2ab   : > { %v1613_v33 = vpop.f32.mrf.mxu2 }
 0x2ac   : > { %v1614_v34 = vadd.f32 %v2792_v10, %v1613_v33 }
 0x2ae   : > { %1737 = vst [vmem:[%s2802_s25 + $0x110] sm:$0xff] %v1614_v34 }
 0x2af   : > { %v1389_v37 = vpop.f32.mrf.mxu3 }
 0x2b0   : > { %1663 = vmatmul.f32.gmra.mxu2 %v1461_v35  ;;  %v1390_v63 = vadd.f32 %v2917_v2, %v1389_v37 }
 0x2b2   : > { %v1467_v6 = vmax.f32 %v1390_v63, 0.0 }
 0x2b3   : > { %v1616_v39 = vpop.f32.mrf.mxu2 }
 0x2b4   : > { %v1617_v41 = vadd.f32 %v2792_v10, %v1616_v39 }
 0x2b6   : > { %1738 = vst [vmem:[%s2802_s25 + $0x118] sm:$0xff] %v1617_v41 }
 0x2b7   : > { %v1392_v43 = vpop.f32.mrf.mxu3 }
 0x2b8   : > { %1666 = vmatmul.f32.gmra.mxu2 %v1462_v42  ;;  %v1393_v9 = vadd.f32 %v2917_v2, %v1392_v43 }
 0x2ba   : > { %v1468_v14 = vmax.f32 %v1393_v9, 0.0 }
 0x2bb   : > { %v1619_v45 = vpop.f32.mrf.mxu2 }
 0x2bc   : > { %v1620_v46 = vadd.f32 %v2792_v10, %v1619_v45 }
 0x2be   : > { %1739 = vst [vmem:[%s2802_s25 + $0x120] sm:$0xff] %v1620_v46 }
 0x2bf   : > { %v1395_v48 = vpop.f32.mrf.mxu3 }
 0x2c0   : > { %1669 = vmatmul.f32.gmra.mxu2 %v1463_v47  ;;  %v1396_v15 = vadd.f32 %v2917_v2, %v1395_v48 }
 0x2c2   : > { %v1469_v19 = vmax.f32 %v1396_v15, 0.0 }
 0x2c3   : > { %v1622_v49 = vpop.f32.mrf.mxu2 }
 0x2c4   : > { %v1623_v50 = vadd.f32 %v2792_v10, %v1622_v49 }
 0x2c6   : > { %1740 = vst [vmem:[%s2802_s25 + $0x128] sm:$0xff] %v1623_v50 }
 0x2c7   : > { %v1398_v52 = vpop.f32.mrf.mxu3 }
 0x2c8   : > { %1672 = vmatmul.f32.gmra.mxu2 %v1464_v51  ;;  %v1399_v17 = vadd.f32 %v2917_v2, %v1398_v52 }
 0x2ca   : > { %v1470_v22 = vmax.f32 %v1399_v17, 0.0 }
 0x2cb   : > { %v1625_v55 = vpop.f32.mrf.mxu2 }
 0x2cc   : > { %v1626_v40 = vadd.f32 %v2792_v10, %v1625_v55 }
 0x2ce   : > { %1741 = vst [vmem:[%s2802_s25 + $0x130] sm:$0xff] %v1626_v40 }
 0x2cf   : > { %v1401_v57 = vpop.f32.mrf.mxu3 }
 0x2d0   : > { %1675 = vmatmul.f32.gmra.mxu2 %v1465_v56  ;;  %v1402_v23 = vadd.f32 %v2917_v2, %v1401_v57 }
 0x2d2   : > { %v1471_v0 = vmax.f32 %v1402_v23, 0.0 }
 0x2d3   : > { %v1628_v58 = vpop.f32.mrf.mxu2 }
 0x2d4   : > { %v1629_v59 = vadd.f32 %v2792_v10, %v1628_v58 }
 0x2d6   : > { %1742 = vst [vmem:[%s2802_s25 + $0x138] sm:$0xff] %v1629_v59 }
 0x2d7   : > { %v1404_v61 = vpop.f32.mrf.mxu3 }
 0x2d8   : > { %1678 = vmatmul.f32.gmra.mxu2 %v1466_v60  ;;  %v1405_v62 = vadd.f32 %v2917_v2, %v1404_v61 }
 0x2da   : > { %v1472_v1 = vmax.f32 %v1405_v62, 0.0 }
 0x2db   : > { %v1631_v3 = vpop.f32.mrf.mxu2 }
 0x2dc   : > { %v1632_v5 = vadd.f32 %v2792_v10, %v1631_v3  ;;  %1696 = vmatmul.f32.vlgmr.msrb.gmra.mxu3 %v1472_v1 }
 0x2de   : > { %1743 = vst [vmem:[%s2802_s25 + $0x140] sm:$0xff] %v1632_v5 }
 0x2df   : > { %v1407_v7 = vpop.f32.mrf.mxu3 }
 0x2e0   : > { %1681 = vmatmul.f32.gmra.mxu2 %v1467_v6  ;;  %v1408_v8 = vadd.f32 %v2917_v2, %v1407_v7 }
 0x2e2   : > { %v1473_v11 = vmax.f32 %v1408_v8, 0.0 }
 0x2e3   : > { %v1634_v12 = vpop.f32.mrf.mxu2 }
 0x2e4   : > { %v1635_v10 = vadd.f32 %v3083_v13, %v1634_v12  ;;  %1699 = vmatmul.f32.gmra.mxu3 %v1473_v11 }
 0x2e6   : > { %1744 = vst [vmem:[%s2802_s25 + $0x148] sm:$0xff] %v1635_v10 }
 0x2e8   : > { %1684 = vmatmul.f32.gmra.mxu2 %v1468_v14 }
 0x2eb   : > { %v1637_v16 = vpop.f32.mrf.mxu2 }
 0x2ec   : > { %v1638_v18 = vadd.f32 %v3083_v13, %v1637_v16 }
 0x2ee   : > { %1745 = vst [vmem:[%s2802_s25 + $0x150] sm:$0xff] %v1638_v18 }
 0x2f0   : > { %1687 = vmatmul.f32.gmra.mxu2 %v1469_v19 }
 0x2f3   : > { %v1640_v20 = vpop.f32.mrf.mxu2 }
 0x2f4   : > { %v1641_v21 = vadd.f32 %v3083_v13, %v1640_v20 }
 0x2f6   : > { %1746 = vst [vmem:[%s2802_s25 + $0x158] sm:$0xff] %v1641_v21 }
 0x2f8   : > { %1690 = vmatmul.f32.gmra.mxu2 %v1470_v22 }
 0x2fb   : > { %v1643_v24 = vpop.f32.mrf.mxu2 }
 0x2fc   : > { %v1644_v26 = vadd.f32 %v3083_v13, %v1643_v24 }
 0x2fe   : > { %1747 = vst [vmem:[%s2802_s25 + $0x160] sm:$0xff] %v1644_v26 }
 0x300   : > { %1693 = vmatmul.f32.gmra.mxu2 %v1471_v0 }
 0x303   : > { %v1646_v25 = vpop.f32.mrf.mxu2 }
 0x304   : > { %v1647_v27 = vadd.f32 %v3083_v13, %v1646_v25 }
 0x306   : > { %1748 = vst [vmem:[%s2802_s25 + $0x168] sm:$0xff] %v1647_v27 }
 0x30b   : > { %v1649_v28 = vpop.f32.mrf.mxu2 }
 0x30c   : > { %v1650_v29 = vadd.f32 %v3083_v13, %v1649_v28 }
 0x30e   : > { %1749 = vst [vmem:[%s2802_s25 + $0x170] sm:$0xff] %v1650_v29 }
 0x313   : > { %v1652_v30 = vpop.f32.mrf.mxu2 }
 0x314   : > { %v1653_v2 = vadd.f32 %v3083_v13, %v1652_v30 }
 0x316   : > { %1750 = vst [vmem:[%s2802_s25 + $0x178] sm:$0xff] %v1653_v2 }
 0x31b   : > { %v1655_v31 = vpop.f32.mrf.mxu2 }
 0x31c   : > { %v1656_v4 = vadd.f32 %v3083_v13, %v1655_v31 }
 0x31e   : > { %1751 = vst [vmem:[%s2802_s25 + $0x180] sm:$0xff] %v1656_v4 }
 0x323   : > { %v1658_v32 = vpop.f32.mrf.mxu2 }
 0x324   : > { %v1659_v33 = vadd.f32 %v3083_v13, %v1658_v32 }
 0x326   : > { %1752 = vst [vmem:[%s2802_s25 + $0x188] sm:$0xff] %v1659_v33 }
 0x32b   : > { %v1661_v34 = vpop.f32.mrf.mxu2 }
 0x32c   : > { %v1662_v35 = vadd.f32 %v3083_v13, %v1661_v34 }
 0x32e   : > { %1753 = vst [vmem:[%s2802_s25 + $0x190] sm:$0xff] %v1662_v35 }
 0x333   : > { %v1664_v37 = vpop.f32.mrf.mxu2 }
 0x334   : > { %v1665_v38 = vadd.f32 %v3083_v13, %v1664_v37 }
 0x336   : > { %1754 = vst [vmem:[%s2802_s25 + $0x198] sm:$0xff] %v1665_v38 }
 0x33b   : > { %v1667_v39 = vpop.f32.mrf.mxu2 }
 0x33c   : > { %v1668_v41 = vadd.f32 %v3083_v13, %v1667_v39 }
 0x33e   : > { %1755 = vst [vmem:[%s2802_s25 + $0x1a0] sm:$0xff] %v1668_v41 }
 0x343   : > { %v1670_v42 = vpop.f32.mrf.mxu2 }
 0x344   : > { %v1671_v43 = vadd.f32 %v3083_v13, %v1670_v42 }
 0x346   : > { %1756 = vst [vmem:[%s2802_s25 + $0x1a8] sm:$0xff] %v1671_v43 }
 0x34b   : > { %v1673_v44 = vpop.f32.mrf.mxu2 }
 0x34c   : > { %v1674_v45 = vadd.f32 %v3083_v13, %v1673_v44 }
 0x34e   : > { %1757 = vst [vmem:[%s2802_s25 + $0x1b0] sm:$0xff] %v1674_v45 }
 0x353   : > { %v1676_v46 = vpop.f32.mrf.mxu2 }
 0x354   : > { %v1677_v47 = vadd.f32 %v3083_v13, %v1676_v46 }
 0x356   : > { %1758 = vst [vmem:[%s2802_s25 + $0x1b8] sm:$0xff] %v1677_v47 }
 0x35b   : > { %v1679_v48 = vpop.f32.mrf.mxu2 }
 0x35c   : > { %v1680_v36 = vadd.f32 %v3083_v13, %v1679_v48 }
 0x35e   : > { %1759 = vst [vmem:[%s2802_s25 + $0x1c0] sm:$0xff] %v1680_v36 }
 0x35f   : > { %v1697_v49 = vpop.f32.mrf.mxu3 }
 0x360   : > { %v1698_v50 = vadd.f32 %v3083_v13, %v1697_v49 }
 0x362   : > { %1765 = vst [vmem:[%s2802_s25 + $0x1f0] sm:$0xff] %v1698_v50 }
 0x363   : > { %v1682_v51 = vpop.f32.mrf.mxu2 }
 0x364   : > { %v1683_v52 = vadd.f32 %v3083_v13, %v1682_v51 }
 0x366   : > { %1760 = vst [vmem:[%s2802_s25 + $0x1c8] sm:$0xff] %v1683_v52 }
 0x367   : > { %v1700_v53 = vpop.f32.mrf.mxu3 }
 0x368   : > { %v1701_v55 = vadd.f32 %v3083_v13, %v1700_v53 }
 0x36a   : > { %1766 = vst [vmem:[%s2802_s25 + $0x1f8] sm:$0xff] %v1701_v55 }
 0x36b   : > { %v1685_v40 = vpop.f32.mrf.mxu2 }
 0x36c   : > { %v1686_v56 = vadd.f32 %v3083_v13, %v1685_v40 }
 0x36e   : > { %1761 = vst [vmem:[%s2802_s25 + $0x1d0] sm:$0xff] %v1686_v56 }
 0x373   : > { %v1688_v57 = vpop.f32.mrf.mxu2 }
 0x374   : > { %v1689_v54 = vadd.f32 %v3083_v13, %v1688_v57 }
 0x376   : > { %1762 = vst [vmem:[%s2802_s25 + $0x1d8] sm:$0xff] %v1689_v54 }
 0x37b   : > { %v1691_v58 = vpop.f32.mrf.mxu2 }
 0x37c   : > { %v1692_v59 = vadd.f32 %v3083_v13, %v1691_v58 }
 0x37e   : > { %1763 = vst [vmem:[%s2802_s25 + $0x1e0] sm:$0xff] %v1692_v59 }
 0x383   : > { %v1694_v60 = vpop.f32.mrf.mxu2 }
 0x384   : > { %v1695_v61 = vadd.f32 %v3083_v13, %v1694_v60 }
 0x386   : > { %1764 = vst [vmem:[%s2802_s25 + $0x1e8] sm:$0xff] %v1695_v61 }
 0x387   : > { %2180 = shalt.err (!%p2177_p3)
}
 0x388   : > { %s2220_s15 = smov 128   ;;  %s2221_s25 = smov 8  }
 0x389   : > { %2026 = dma.vmem_to_hbm [thread:$0]  (%p2290_p5), %s1781_s12, 8192, %s1783_s13, %s1768_s14, %s2220_s15, %s2220_s15, %s2221_s25  }
 0x38a PF: > { %p2032_p4 = scmp.ge.s32.totalorder %s2215_s21, 2  ;;  %s1797_s6 = sand.u32 1, %s2203_s18  }
 0x38b   : > { %s1798_s7 = scalar_lea.sflag [#allocation3], %s1797_s6 }
 0x38c   : > { %p2029_p7 = pnand %p2032_p4, %p2294_p6 }
 0x38e   : > { %p2030_p8 = pneg %p2029_p7 }
 0x390   : > { %2198 = dma.done.wait (%p2030_p8), %s1798_s7, 8192  }
 0x391   : > { %2200 = vsyncadd (%p2030_p8), %s1798_s7, 4294959104  ;;  %p15_p9 = scmp.ge.s32.totalorder %s2277_s24, 6   ;;  %s3176_s18 = smov %s2207_s19 }
 0x392   : > { %s3177_s19 = smov %s2211_s20  ;;  %s3178_s20 = smov %s2288_s27 }
 0x393   : > { %s3179_s21 = smov %s2277_s24  ;;  %17 = sbr.rel (!%p15_p9) target bundleno = 3 (0x3), region = 75 }
 0x398   :  { %1804 = vsyncpa [#allocation3], 1 }
 0x399   :  { %1806 = vsyncpa [#allocation3 + $0x1], 1 }

</bundles_post_ra>
